<compile_context>
chip_gen: v5e
topology: v5e:2x2
jax: 0.10.0
libtpu: 0.0.40
codegen_flags: <defaults>
</compile_context>

<pallas_src>
import functools

import jax
import jax.numpy as jnp
from jax.experimental import pallas as pl
from jax.experimental.pallas import tpu as pltpu


def _gru_attention_kernel(x_ref, wih0_ref, bih0_ref, whhbd_ref, bhhbd_ref,
                          wih1_ref, bih1_ref, v_ref, wout_ref, bout_ref,
                          y_ref, alpha_ref, *, B, T, H):
    f32 = jnp.float32
    H2 = 2 * H
    H3 = 3 * H

    # Small recurrent weights resident in vregs/VMEM for the whole kernel.
    whh_bd = whhbd_ref[...]          # (2H, 6H) block-diagonal [whh0 ; whh1]
    bhh_bd = bhhbd_ref[...]          # (1, 6H)
    wih1 = wih1_ref[...]             # (H, 3H)
    bih1 = bih1_ref[...]             # (1, 3H)

    # Hoisted layer-0 input gates for ALL timesteps: one (T*B, I) @ (I, 3H)
    # matmul before the recurrence.  x is time-major, so the per-step access
    # below is a contiguous static row slice.
    gi0_all = (jnp.dot(x_ref[...], wih0_ref[...], preferred_element_type=f32)
               + bih0_ref[...])                                    # (T*B, 3H)

    def gru_gates(gi, gh, h):
        # PyTorch GRU cell, gates packed r|z|n along the lane axis.
        # r and z share one fused sigmoid over the first 2H lanes.
        rz = jax.nn.sigmoid(gi[:, :H2] + gh[:, :H2])
        r = rz[:, :H]
        z = rz[:, H:]
        n = jnp.tanh(gi[:, H2:] + r * gh[:, H2:])
        return (1.0 - z) * n + z * h

    h0 = jnp.zeros((B, H), f32)
    h1 = jnp.zeros((B, H), f32)
    h1_steps = []
    # Fully unrolled recurrence (T is a tiny static Python int).  Per step the
    # serialized chain is TWO MXU dots: the block-diagonal recurrent dot (gh0
    # and gh1 both depend only on the OLD states) and the layer-1 input dot on
    # the freshly updated h0.
    # TODO(synk): at realistic T, switch to lax.fori_loop(unroll=8) writing a
    # chunked (>=8-timestep) VMEM scratch instead of a Python list + stack.
    for t in range(T):
        gi0 = gi0_all[t * B:(t + 1) * B, :]                        # (B, 3H)
        gh = jnp.dot(jnp.concatenate([h0, h1], axis=1), whh_bd,
                     preferred_element_type=f32) + bhh_bd          # (B, 6H)
        h0 = gru_gates(gi0, gh[:, :H3], h0)
        gi1 = jnp.dot(h0, wih1, preferred_element_type=f32) + bih1
        h1 = gru_gates(gi1, gh[:, H3:], h1)
        h1_steps.append(h1)

    # --- Attention, fully batched after the recurrence, no VMEM round-trip ---
    go = jnp.stack(h1_steps, axis=1)                               # (B, T, H)
    th = jnp.tanh(go)
    logits = jnp.sum(th * v_ref[...], axis=-1)                     # (B, T), lane-dense
    logits = logits - jnp.max(logits, axis=-1, keepdims=True)
    e = jnp.exp(logits)
    denom = jnp.sum(e, axis=-1, keepdims=True)                     # (B, 1)
    alpha = e * pl.reciprocal(denom, approx=True)                  # (B, T)
    alpha_ref[...] = alpha                                         # lane-dense output

    ctx = jnp.tanh(jnp.sum(alpha[:, :, None] * go, axis=1))        # (B, H)
    y_ref[...] = (jnp.dot(ctx, wout_ref[...], preferred_element_type=f32)
                  + bout_ref[...])


def gru_attention_forward(x, params):
    """x: (B, T, input_size) float32 -> (y (B, out), alpha (B, T, 1))."""
    B, T, I = x.shape
    H = params["whh0"].shape[1]
    O = params["wout"].shape[0]

    # Pack GRU gate weights as (in_dim, 3H) = transpose of PyTorch's
    # (3H, in_dim), so gate columns come out in r|z|n order.
    wih0 = params["wih0"].T.astype(jnp.float32)                    # (I, 3H)
    wih1 = params["wih1"].T.astype(jnp.float32)                    # (H, 3H)
    bih0 = params["bih0"].reshape(1, 3 * H).astype(jnp.float32)
    bih1 = params["bih1"].reshape(1, 3 * H).astype(jnp.float32)
    # Block-diagonal recurrent weight: [h0 | h1] @ whh_bd == [gh0 | gh1],
    # so both layers' recurrent gates come from ONE MXU dot per step.
    whh_bd = jnp.zeros((2 * H, 6 * H), jnp.float32)
    whh_bd = whh_bd.at[:H, :3 * H].set(params["whh0"].T)
    whh_bd = whh_bd.at[H:, 3 * H:].set(params["whh1"].T)
    bhh_bd = jnp.concatenate([params["bhh0"], params["bhh1"]]
                             ).reshape(1, 6 * H).astype(jnp.float32)
    # Fold the two attention projections into a single (1, H) row.
    v_row = (params["watt"] @ params["uatt"]).reshape(1, H).astype(jnp.float32)
    wout = params["wout"].T.astype(jnp.float32)                    # (H, O)
    bout = params["bout"].reshape(1, O).astype(jnp.float32)        # (1, O)

    # Time-major flatten so per-step gi0 access inside the kernel is a
    # contiguous static row slice (layout plumbing stays in the wrapper).
    x_tm = jnp.transpose(x.astype(jnp.float32), (1, 0, 2)).reshape(T * B, I)

    vmem = pl.BlockSpec(memory_space=pltpu.MemorySpace.VMEM)
    kernel = functools.partial(_gru_attention_kernel, B=B, T=T, H=H)
    # TODO(synk): at realistic B/T, add a batch grid axis with
    # dimension_semantics=("parallel",) (uses both v7x TensorCores), chunk
    # gi0_all over T, and set vmem_limit_bytes per generation (64 MiB on v7x,
    # 16 MiB scoped default on v5e).
    y, alpha_bt = pl.pallas_call(
        kernel,
        out_shape=(jax.ShapeDtypeStruct((B, O), jnp.float32),
                   jax.ShapeDtypeStruct((B, T), jnp.float32)),
        in_specs=[vmem] * 10,
        out_specs=(vmem, vmem),
    )(x_tm, wih0, bih0, whh_bd, bhh_bd, wih1, bih1, v_row, wout, bout)
    return y, alpha_bt[:, :, None]


def init_params(key, input_size=1, hidden_size=16, attention_size=8,
                output_size=1):
    """Deterministic synthetic parameters (PyTorch layouts)."""
    H, A, I, O = hidden_size, attention_size, input_size, output_size
    keys = jax.random.split(key, 12)
    k = 1.0 / jnp.sqrt(jnp.float32(H))

    def uni(kk, shape):
        return jax.random.uniform(kk, shape, jnp.float32, -k, k)

    # TODO(synk): the torch module re-samples W/U with xavier_normal_ on every
    # forward (non-reproducible); here they are fixed deterministic parameters.
    return dict(
        wih0=uni(keys[0], (3 * H, I)),
        whh0=uni(keys[1], (3 * H, H)),
        bih0=uni(keys[2], (3 * H,)),
        bhh0=uni(keys[3], (3 * H,)),
        wih1=uni(keys[4], (3 * H, H)),
        whh1=uni(keys[5], (3 * H, H)),
        bih1=uni(keys[6], (3 * H,)),
        bhh1=uni(keys[7], (3 * H,)),
        watt=jax.random.normal(keys[8], (H, A), jnp.float32)
             * jnp.sqrt(2.0 / (H + A)),
        uatt=jax.random.normal(keys[9], (A, 1), jnp.float32)
             * jnp.sqrt(2.0 / (A + 1)),
        wout=uni(keys[10], (O, H)),
        bout=uni(keys[11], (O,)),
    )


def reference_forward(x, p):
    """Pure-JAX re-implementation of the PyTorch forward (for validation)."""
    B, T, _ = x.shape
    H = p["whh0"].shape[1]

    def cell(x_t, h, wih, whh, bih, bhh):
        gi = x_t @ wih.T + bih
        gh = h @ whh.T + bhh
        i_r, i_z, i_n = jnp.split(gi, 3, axis=1)
        h_r, h_z, h_n = jnp.split(gh, 3, axis=1)
        r = jax.nn.sigmoid(i_r + h_r)
        z = jax.nn.sigmoid(i_z + h_z)
        n = jnp.tanh(i_n + r * h_n)
        return (1.0 - z) * n + z * h

    h0 = jnp.zeros((B, H), jnp.float32)
    h1 = jnp.zeros((B, H), jnp.float32)
    outs = []
    for t in range(T):
        h0 = cell(x[:, t, :], h0, p["wih0"], p["whh0"], p["bih0"], p["bhh0"])
        h1 = cell(h0, h1, p["wih1"], p["whh1"], p["bih1"], p["bhh1"])
        outs.append(h1)
    out = jnp.stack(outs, axis=1)                           # (B, T, H)

    th = jnp.tanh(out).reshape(-1, H)
    logits = (th @ p["watt"] @ p["uatt"]).reshape(B, T)
    logits = logits - logits.max(axis=1, keepdims=True)
    e = jnp.exp(logits)
    alpha = e / e.sum(axis=1, keepdims=True)                # (B, T)
    ctx = jnp.tanh(jnp.einsum("bth,bt->bh", out, alpha))    # (B, H)
    y = ctx @ p["wout"].T + p["bout"]
    return y, alpha[:, :, None]


if __name__ == "__main__":
    key = jax.random.PRNGKey(0)
    pkey, xkey = jax.random.split(key)

    B, T, I = 2, 8, 1          # batch, seq, input_size
    H, A, O = 16, 8, 1         # hidden_size, attention_size, output_size

    params = init_params(pkey, input_size=I, hidden_size=H,
                         attention_size=A, output_size=O)
    x = jax.random.normal(xkey, (B, T, I), jnp.float32)

    y, alpha = jax.jit(gru_attention_forward)(x, params)
    y = jax.block_until_ready(y)
    alpha = jax.block_until_ready(alpha)

    assert y.shape == (B, O) and alpha.shape == (B, T, 1)

    y_ref, alpha_ref = reference_forward(x, params)
    if not (bool(jnp.allclose(y, y_ref, atol=5e-3, rtol=5e-3)) and
            bool(jnp.allclose(alpha, alpha_ref, atol=5e-3, rtol=5e-3))):
        raise AssertionError("Pallas kernel does not match pure-JAX reference")

    print("KERNEL_OK")
</pallas_src>

<mosaic_0001>
module attributes {stable_mosaic.version = 11 : i64} {
  func.func @_gru_attention_kernel(%arg0: memref<16x1xf32, #tpu.memory_space<vmem>>, %arg1: memref<1x48xf32, #tpu.memory_space<vmem>>, %arg2: memref<1x48xf32, #tpu.memory_space<vmem>>, %arg3: memref<32x96xf32, #tpu.memory_space<vmem>>, %arg4: memref<1x96xf32, #tpu.memory_space<vmem>>, %arg5: memref<16x48xf32, #tpu.memory_space<vmem>>, %arg6: memref<1x48xf32, #tpu.memory_space<vmem>>, %arg7: memref<1x16xf32, #tpu.memory_space<vmem>>, %arg8: memref<16x1xf32, #tpu.memory_space<vmem>>, %arg9: memref<1x1xf32, #tpu.memory_space<vmem>>, %arg10: memref<2x1xf32, #tpu.memory_space<vmem>>, %arg11: memref<2x8xf32, #tpu.memory_space<vmem>>) attributes {dimension_semantics = [], scalar_prefetch = 0 : i64, scratch_operands = 0 : i64, tpu.core_type = #tpu.core_type<tc>} {
    %c0 = arith.constant 0 : index
    %c0_0 = arith.constant 0 : index
    %0 = vector.load %arg3[%c0, %c0_0] : memref<32x96xf32, #tpu.memory_space<vmem>>, vector<32x96xf32>
    %c0_1 = arith.constant 0 : index
    %c0_2 = arith.constant 0 : index
    %1 = vector.load %arg4[%c0_1, %c0_2] : memref<1x96xf32, #tpu.memory_space<vmem>>, vector<1x96xf32>
    %c0_3 = arith.constant 0 : index
    %c0_4 = arith.constant 0 : index
    %2 = vector.load %arg5[%c0_3, %c0_4] : memref<16x48xf32, #tpu.memory_space<vmem>>, vector<16x48xf32>
    %c0_5 = arith.constant 0 : index
    %c0_6 = arith.constant 0 : index
    %3 = vector.load %arg6[%c0_5, %c0_6] : memref<1x48xf32, #tpu.memory_space<vmem>>, vector<1x48xf32>
    %c0_7 = arith.constant 0 : index
    %c0_8 = arith.constant 0 : index
    %4 = vector.load %arg0[%c0_7, %c0_8] : memref<16x1xf32, #tpu.memory_space<vmem>>, vector<16x1xf32>
    %c0_9 = arith.constant 0 : index
    %c0_10 = arith.constant 0 : index
    %5 = vector.load %arg1[%c0_9, %c0_10] : memref<1x48xf32, #tpu.memory_space<vmem>>, vector<1x48xf32>
    %cst = arith.constant dense<0.000000e+00> : vector<16x48xf32>
    %6 = tpu.matmul %4, %5, %cst {dimension_numbers = #tpu.dot_dimension_numbers<[1], [0], [0], [1], [0, 0, 1, 1], [], []>} : vector<16x1xf32>, vector<1x48xf32>, vector<16x48xf32> -> vector<16x48xf32>
    %c0_11 = arith.constant 0 : index
    %c0_12 = arith.constant 0 : index
    %7 = vector.load %arg2[%c0_11, %c0_12] : memref<1x48xf32, #tpu.memory_space<vmem>>, vector<1x48xf32>
    %8 = vector.broadcast %7 : vector<1x48xf32> to vector<16x48xf32>
    %9 = arith.addf %6, %8 : vector<16x48xf32>
    %cst_13 = arith.constant 0.000000e+00 : f32
    %10 = vector.broadcast %cst_13 : f32 to vector<2x16xf32>
    %cst_14 = arith.constant 0.000000e+00 : f32
    %11 = vector.broadcast %cst_14 : f32 to vector<2x16xf32>
    %12 = vector.extract_strided_slice %9 {offsets = [0, 0], sizes = [2, 48], strides = [1, 1]} : vector<16x48xf32> to vector<2x48xf32>
    %13 = tpu.concatenate %10, %11 in 1 : vector<2x16xf32>, vector<2x16xf32> -> vector<2x32xf32>
    %cst_15 = arith.constant dense<0.000000e+00> : vector<2x96xf32>
    %14 = tpu.matmul %13, %0, %cst_15 {dimension_numbers = #tpu.dot_dimension_numbers<[1], [0], [0], [1], [0, 0, 1, 1], [], []>} : vector<2x32xf32>, vector<32x96xf32>, vector<2x96xf32> -> vector<2x96xf32>
    %15 = vector.broadcast %1 : vector<1x96xf32> to vector<2x96xf32>
    %16 = arith.addf %14, %15 : vector<2x96xf32>
    %17 = vector.extract_strided_slice %16 {offsets = [0, 0], sizes = [2, 48], strides = [1, 1]} : vector<2x96xf32> to vector<2x48xf32>
    %18 = vector.extract_strided_slice %12 {offsets = [0, 0], sizes = [2, 32], strides = [1, 1]} : vector<2x48xf32> to vector<2x32xf32>
    %19 = vector.extract_strided_slice %17 {offsets = [0, 0], sizes = [2, 32], strides = [1, 1]} : vector<2x48xf32> to vector<2x32xf32>
    %20 = arith.addf %18, %19 : vector<2x32xf32>
    %21 = arith.negf %20 : vector<2x32xf32>
    %22 = math.exp %21 : vector<2x32xf32>
    %cst_16 = arith.constant 1.000000e+00 : f32
    %23 = vector.broadcast %cst_16 : f32 to vector<2x32xf32>
    %24 = arith.addf %23, %22 : vector<2x32xf32>
    %25 = arith.divf %23, %24 : vector<2x32xf32>
    %26 = vector.extract_strided_slice %25 {offsets = [0, 0], sizes = [2, 16], strides = [1, 1]} : vector<2x32xf32> to vector<2x16xf32>
    %27 = vector.extract_strided_slice %25 {offsets = [0, 16], sizes = [2, 16], strides = [1, 1]} : vector<2x32xf32> to vector<2x16xf32>
    %28 = vector.extract_strided_slice %12 {offsets = [0, 32], sizes = [2, 16], strides = [1, 1]} : vector<2x48xf32> to vector<2x16xf32>
    %29 = vector.extract_strided_slice %17 {offsets = [0, 32], sizes = [2, 16], strides = [1, 1]} : vector<2x48xf32> to vector<2x16xf32>
    %30 = arith.mulf %26, %29 : vector<2x16xf32>
    %31 = arith.addf %28, %30 : vector<2x16xf32>
    %32 = math.tanh %31 : vector<2x16xf32>
    %cst_17 = arith.constant 1.000000e+00 : f32
    %33 = vector.broadcast %cst_17 : f32 to vector<2x16xf32>
    %34 = arith.subf %33, %27 : vector<2x16xf32>
    %35 = arith.mulf %34, %32 : vector<2x16xf32>
    %36 = arith.mulf %27, %10 : vector<2x16xf32>
    %37 = arith.addf %35, %36 : vector<2x16xf32>
    %cst_18 = arith.constant dense<0.000000e+00> : vector<2x48xf32>
    %38 = tpu.matmul %37, %2, %cst_18 {dimension_numbers = #tpu.dot_dimension_numbers<[1], [0], [0], [1], [0, 0, 1, 1], [], []>} : vector<2x16xf32>, vector<16x48xf32>, vector<2x48xf32> -> vector<2x48xf32>
    %39 = vector.broadcast %3 : vector<1x48xf32> to vector<2x48xf32>
    %40 = arith.addf %38, %39 : vector<2x48xf32>
    %41 = vector.extract_strided_slice %16 {offsets = [0, 48], sizes = [2, 48], strides = [1, 1]} : vector<2x96xf32> to vector<2x48xf32>
    %42 = vector.extract_strided_slice %40 {offsets = [0, 0], sizes = [2, 32], strides = [1, 1]} : vector<2x48xf32> to vector<2x32xf32>
    %43 = vector.extract_strided_slice %41 {offsets = [0, 0], sizes = [2, 32], strides = [1, 1]} : vector<2x48xf32> to vector<2x32xf32>
    %44 = arith.addf %42, %43 : vector<2x32xf32>
    %45 = arith.negf %44 : vector<2x32xf32>
    %46 = math.exp %45 : vector<2x32xf32>
    %cst_19 = arith.constant 1.000000e+00 : f32
    %47 = vector.broadcast %cst_19 : f32 to vector<2x32xf32>
    %48 = arith.addf %47, %46 : vector<2x32xf32>
    %49 = arith.divf %47, %48 : vector<2x32xf32>
    %50 = vector.extract_strided_slice %49 {offsets = [0, 0], sizes = [2, 16], strides = [1, 1]} : vector<2x32xf32> to vector<2x16xf32>
    %51 = vector.extract_strided_slice %49 {offsets = [0, 16], sizes = [2, 16], strides = [1, 1]} : vector<2x32xf32> to vector<2x16xf32>
    %52 = vector.extract_strided_slice %40 {offsets = [0, 32], sizes = [2, 16], strides = [1, 1]} : vector<2x48xf32> to vector<2x16xf32>
    %53 = vector.extract_strided_slice %41 {offsets = [0, 32], sizes = [2, 16], strides = [1, 1]} : vector<2x48xf32> to vector<2x16xf32>
    %54 = arith.mulf %50, %53 : vector<2x16xf32>
    %55 = arith.addf %52, %54 : vector<2x16xf32>
    %56 = math.tanh %55 : vector<2x16xf32>
    %cst_20 = arith.constant 1.000000e+00 : f32
    %57 = vector.broadcast %cst_20 : f32 to vector<2x16xf32>
    %58 = arith.subf %57, %51 : vector<2x16xf32>
    %59 = arith.mulf %58, %56 : vector<2x16xf32>
    %60 = arith.mulf %51, %11 : vector<2x16xf32>
    %61 = arith.addf %59, %60 : vector<2x16xf32>
    %62 = vector.extract_strided_slice %9 {offsets = [2, 0], sizes = [2, 48], strides = [1, 1]} : vector<16x48xf32> to vector<2x48xf32>
    %63 = tpu.concatenate %37, %61 in 1 : vector<2x16xf32>, vector<2x16xf32> -> vector<2x32xf32>
    %cst_21 = arith.constant dense<0.000000e+00> : vector<2x96xf32>
    %64 = tpu.matmul %63, %0, %cst_21 {dimension_numbers = #tpu.dot_dimension_numbers<[1], [0], [0], [1], [0, 0, 1, 1], [], []>} : vector<2x32xf32>, vector<32x96xf32>, vector<2x96xf32> -> vector<2x96xf32>
    %65 = vector.broadcast %1 : vector<1x96xf32> to vector<2x96xf32>
    %66 = arith.addf %64, %65 : vector<2x96xf32>
    %67 = vector.extract_strided_slice %66 {offsets = [0, 0], sizes = [2, 48], strides = [1, 1]} : vector<2x96xf32> to vector<2x48xf32>
    %68 = vector.extract_strided_slice %62 {offsets = [0, 0], sizes = [2, 32], strides = [1, 1]} : vector<2x48xf32> to vector<2x32xf32>
    %69 = vector.extract_strided_slice %67 {offsets = [0, 0], sizes = [2, 32], strides = [1, 1]} : vector<2x48xf32> to vector<2x32xf32>
    %70 = arith.addf %68, %69 : vector<2x32xf32>
    %71 = arith.negf %70 : vector<2x32xf32>
    %72 = math.exp %71 : vector<2x32xf32>
    %cst_22 = arith.constant 1.000000e+00 : f32
    %73 = vector.broadcast %cst_22 : f32 to vector<2x32xf32>
    %74 = arith.addf %73, %72 : vector<2x32xf32>
    %75 = arith.divf %73, %74 : vector<2x32xf32>
    %76 = vector.extract_strided_slice %75 {offsets = [0, 0], sizes = [2, 16], strides = [1, 1]} : vector<2x32xf32> to vector<2x16xf32>
    %77 = vector.extract_strided_slice %75 {offsets = [0, 16], sizes = [2, 16], strides = [1, 1]} : vector<2x32xf32> to vector<2x16xf32>
    %78 = vector.extract_strided_slice %62 {offsets = [0, 32], sizes = [2, 16], strides = [1, 1]} : vector<2x48xf32> to vector<2x16xf32>
    %79 = vector.extract_strided_slice %67 {offsets = [0, 32], sizes = [2, 16], strides = [1, 1]} : vector<2x48xf32> to vector<2x16xf32>
    %80 = arith.mulf %76, %79 : vector<2x16xf32>
    %81 = arith.addf %78, %80 : vector<2x16xf32>
    %82 = math.tanh %81 : vector<2x16xf32>
    %cst_23 = arith.constant 1.000000e+00 : f32
    %83 = vector.broadcast %cst_23 : f32 to vector<2x16xf32>
    %84 = arith.subf %83, %77 : vector<2x16xf32>
    %85 = arith.mulf %84, %82 : vector<2x16xf32>
    %86 = arith.mulf %77, %37 : vector<2x16xf32>
    %87 = arith.addf %85, %86 : vector<2x16xf32>
    %cst_24 = arith.constant dense<0.000000e+00> : vector<2x48xf32>
    %88 = tpu.matmul %87, %2, %cst_24 {dimension_numbers = #tpu.dot_dimension_numbers<[1], [0], [0], [1], [0, 0, 1, 1], [], []>} : vector<2x16xf32>, vector<16x48xf32>, vector<2x48xf32> -> vector<2x48xf32>
    %89 = vector.broadcast %3 : vector<1x48xf32> to vector<2x48xf32>
    %90 = arith.addf %88, %89 : vector<2x48xf32>
    %91 = vector.extract_strided_slice %66 {offsets = [0, 48], sizes = [2, 48], strides = [1, 1]} : vector<2x96xf32> to vector<2x48xf32>
    %92 = vector.extract_strided_slice %90 {offsets = [0, 0], sizes = [2, 32], strides = [1, 1]} : vector<2x48xf32> to vector<2x32xf32>
    %93 = vector.extract_strided_slice %91 {offsets = [0, 0], sizes = [2, 32], strides = [1, 1]} : vector<2x48xf32> to vector<2x32xf32>
    %94 = arith.addf %92, %93 : vector<2x32xf32>
    %95 = arith.negf %94 : vector<2x32xf32>
    %96 = math.exp %95 : vector<2x32xf32>
    %cst_25 = arith.constant 1.000000e+00 : f32
    %97 = vector.broadcast %cst_25 : f32 to vector<2x32xf32>
    %98 = arith.addf %97, %96 : vector<2x32xf32>
    %99 = arith.divf %97, %98 : vector<2x32xf32>
    %100 = vector.extract_strided_slice %99 {offsets = [0, 0], sizes = [2, 16], strides = [1, 1]} : vector<2x32xf32> to vector<2x16xf32>
    %101 = vector.extract_strided_slice %99 {offsets = [0, 16], sizes = [2, 16], strides = [1, 1]} : vector<2x32xf32> to vector<2x16xf32>
    %102 = vector.extract_strided_slice %90 {offsets = [0, 32], sizes = [2, 16], strides = [1, 1]} : vector<2x48xf32> to vector<2x16xf32>
    %103 = vector.extract_strided_slice %91 {offsets = [0, 32], sizes = [2, 16], strides = [1, 1]} : vector<2x48xf32> to vector<2x16xf32>
    %104 = arith.mulf %100, %103 : vector<2x16xf32>
    %105 = arith.addf %102, %104 : vector<2x16xf32>
    %106 = math.tanh %105 : vector<2x16xf32>
    %cst_26 = arith.constant 1.000000e+00 : f32
    %107 = vector.broadcast %cst_26 : f32 to vector<2x16xf32>
    %108 = arith.subf %107, %101 : vector<2x16xf32>
    %109 = arith.mulf %108, %106 : vector<2x16xf32>
    %110 = arith.mulf %101, %61 : vector<2x16xf32>
    %111 = arith.addf %109, %110 : vector<2x16xf32>
    %112 = vector.extract_strided_slice %9 {offsets = [4, 0], sizes = [2, 48], strides = [1, 1]} : vector<16x48xf32> to vector<2x48xf32>
    %113 = tpu.concatenate %87, %111 in 1 : vector<2x16xf32>, vector<2x16xf32> -> vector<2x32xf32>
    %cst_27 = arith.constant dense<0.000000e+00> : vector<2x96xf32>
    %114 = tpu.matmul %113, %0, %cst_27 {dimension_numbers = #tpu.dot_dimension_numbers<[1], [0], [0], [1], [0, 0, 1, 1], [], []>} : vector<2x32xf32>, vector<32x96xf32>, vector<2x96xf32> -> vector<2x96xf32>
    %115 = vector.broadcast %1 : vector<1x96xf32> to vector<2x96xf32>
    %116 = arith.addf %114, %115 : vector<2x96xf32>
    %117 = vector.extract_strided_slice %116 {offsets = [0, 0], sizes = [2, 48], strides = [1, 1]} : vector<2x96xf32> to vector<2x48xf32>
    %118 = vector.extract_strided_slice %112 {offsets = [0, 0], sizes = [2, 32], strides = [1, 1]} : vector<2x48xf32> to vector<2x32xf32>
    %119 = vector.extract_strided_slice %117 {offsets = [0, 0], sizes = [2, 32], strides = [1, 1]} : vector<2x48xf32> to vector<2x32xf32>
    %120 = arith.addf %118, %119 : vector<2x32xf32>
    %121 = arith.negf %120 : vector<2x32xf32>
    %122 = math.exp %121 : vector<2x32xf32>
    %cst_28 = arith.constant 1.000000e+00 : f32
    %123 = vector.broadcast %cst_28 : f32 to vector<2x32xf32>
    %124 = arith.addf %123, %122 : vector<2x32xf32>
    %125 = arith.divf %123, %124 : vector<2x32xf32>
    %126 = vector.extract_strided_slice %125 {offsets = [0, 0], sizes = [2, 16], strides = [1, 1]} : vector<2x32xf32> to vector<2x16xf32>
    %127 = vector.extract_strided_slice %125 {offsets = [0, 16], sizes = [2, 16], strides = [1, 1]} : vector<2x32xf32> to vector<2x16xf32>
    %128 = vector.extract_strided_slice %112 {offsets = [0, 32], sizes = [2, 16], strides = [1, 1]} : vector<2x48xf32> to vector<2x16xf32>
    %129 = vector.extract_strided_slice %117 {offsets = [0, 32], sizes = [2, 16], strides = [1, 1]} : vector<2x48xf32> to vector<2x16xf32>
    %130 = arith.mulf %126, %129 : vector<2x16xf32>
    %131 = arith.addf %128, %130 : vector<2x16xf32>
    %132 = math.tanh %131 : vector<2x16xf32>
    %cst_29 = arith.constant 1.000000e+00 : f32
    %133 = vector.broadcast %cst_29 : f32 to vector<2x16xf32>
    %134 = arith.subf %133, %127 : vector<2x16xf32>
    %135 = arith.mulf %134, %132 : vector<2x16xf32>
    %136 = arith.mulf %127, %87 : vector<2x16xf32>
    %137 = arith.addf %135, %136 : vector<2x16xf32>
    %cst_30 = arith.constant dense<0.000000e+00> : vector<2x48xf32>
    %138 = tpu.matmul %137, %2, %cst_30 {dimension_numbers = #tpu.dot_dimension_numbers<[1], [0], [0], [1], [0, 0, 1, 1], [], []>} : vector<2x16xf32>, vector<16x48xf32>, vector<2x48xf32> -> vector<2x48xf32>
    %139 = vector.broadcast %3 : vector<1x48xf32> to vector<2x48xf32>
    %140 = arith.addf %138, %139 : vector<2x48xf32>
    %141 = vector.extract_strided_slice %116 {offsets = [0, 48], sizes = [2, 48], strides = [1, 1]} : vector<2x96xf32> to vector<2x48xf32>
    %142 = vector.extract_strided_slice %140 {offsets = [0, 0], sizes = [2, 32], strides = [1, 1]} : vector<2x48xf32> to vector<2x32xf32>
    %143 = vector.extract_strided_slice %141 {offsets = [0, 0], sizes = [2, 32], strides = [1, 1]} : vector<2x48xf32> to vector<2x32xf32>
    %144 = arith.addf %142, %143 : vector<2x32xf32>
    %145 = arith.negf %144 : vector<2x32xf32>
    %146 = math.exp %145 : vector<2x32xf32>
    %cst_31 = arith.constant 1.000000e+00 : f32
    %147 = vector.broadcast %cst_31 : f32 to vector<2x32xf32>
    %148 = arith.addf %147, %146 : vector<2x32xf32>
    %149 = arith.divf %147, %148 : vector<2x32xf32>
    %150 = vector.extract_strided_slice %149 {offsets = [0, 0], sizes = [2, 16], strides = [1, 1]} : vector<2x32xf32> to vector<2x16xf32>
    %151 = vector.extract_strided_slice %149 {offsets = [0, 16], sizes = [2, 16], strides = [1, 1]} : vector<2x32xf32> to vector<2x16xf32>
    %152 = vector.extract_strided_slice %140 {offsets = [0, 32], sizes = [2, 16], strides = [1, 1]} : vector<2x48xf32> to vector<2x16xf32>
    %153 = vector.extract_strided_slice %141 {offsets = [0, 32], sizes = [2, 16], strides = [1, 1]} : vector<2x48xf32> to vector<2x16xf32>
    %154 = arith.mulf %150, %153 : vector<2x16xf32>
    %155 = arith.addf %152, %154 : vector<2x16xf32>
    %156 = math.tanh %155 : vector<2x16xf32>
    %cst_32 = arith.constant 1.000000e+00 : f32
    %157 = vector.broadcast %cst_32 : f32 to vector<2x16xf32>
    %158 = arith.subf %157, %151 : vector<2x16xf32>
    %159 = arith.mulf %158, %156 : vector<2x16xf32>
    %160 = arith.mulf %151, %111 : vector<2x16xf32>
    %161 = arith.addf %159, %160 : vector<2x16xf32>
    %162 = vector.extract_strided_slice %9 {offsets = [6, 0], sizes = [2, 48], strides = [1, 1]} : vector<16x48xf32> to vector<2x48xf32>
    %163 = tpu.concatenate %137, %161 in 1 : vector<2x16xf32>, vector<2x16xf32> -> vector<2x32xf32>
    %cst_33 = arith.constant dense<0.000000e+00> : vector<2x96xf32>
    %164 = tpu.matmul %163, %0, %cst_33 {dimension_numbers = #tpu.dot_dimension_numbers<[1], [0], [0], [1], [0, 0, 1, 1], [], []>} : vector<2x32xf32>, vector<32x96xf32>, vector<2x96xf32> -> vector<2x96xf32>
    %165 = vector.broadcast %1 : vector<1x96xf32> to vector<2x96xf32>
    %166 = arith.addf %164, %165 : vector<2x96xf32>
    %167 = vector.extract_strided_slice %166 {offsets = [0, 0], sizes = [2, 48], strides = [1, 1]} : vector<2x96xf32> to vector<2x48xf32>
    %168 = vector.extract_strided_slice %162 {offsets = [0, 0], sizes = [2, 32], strides = [1, 1]} : vector<2x48xf32> to vector<2x32xf32>
    %169 = vector.extract_strided_slice %167 {offsets = [0, 0], sizes = [2, 32], strides = [1, 1]} : vector<2x48xf32> to vector<2x32xf32>
    %170 = arith.addf %168, %169 : vector<2x32xf32>
    %171 = arith.negf %170 : vector<2x32xf32>
    %172 = math.exp %171 : vector<2x32xf32>
    %cst_34 = arith.constant 1.000000e+00 : f32
    %173 = vector.broadcast %cst_34 : f32 to vector<2x32xf32>
    %174 = arith.addf %173, %172 : vector<2x32xf32>
    %175 = arith.divf %173, %174 : vector<2x32xf32>
    %176 = vector.extract_strided_slice %175 {offsets = [0, 0], sizes = [2, 16], strides = [1, 1]} : vector<2x32xf32> to vector<2x16xf32>
    %177 = vector.extract_strided_slice %175 {offsets = [0, 16], sizes = [2, 16], strides = [1, 1]} : vector<2x32xf32> to vector<2x16xf32>
    %178 = vector.extract_strided_slice %162 {offsets = [0, 32], sizes = [2, 16], strides = [1, 1]} : vector<2x48xf32> to vector<2x16xf32>
    %179 = vector.extract_strided_slice %167 {offsets = [0, 32], sizes = [2, 16], strides = [1, 1]} : vector<2x48xf32> to vector<2x16xf32>
    %180 = arith.mulf %176, %179 : vector<2x16xf32>
    %181 = arith.addf %178, %180 : vector<2x16xf32>
    %182 = math.tanh %181 : vector<2x16xf32>
    %cst_35 = arith.constant 1.000000e+00 : f32
    %183 = vector.broadcast %cst_35 : f32 to vector<2x16xf32>
    %184 = arith.subf %183, %177 : vector<2x16xf32>
    %185 = arith.mulf %184, %182 : vector<2x16xf32>
    %186 = arith.mulf %177, %137 : vector<2x16xf32>
    %187 = arith.addf %185, %186 : vector<2x16xf32>
    %cst_36 = arith.constant dense<0.000000e+00> : vector<2x48xf32>
    %188 = tpu.matmul %187, %2, %cst_36 {dimension_numbers = #tpu.dot_dimension_numbers<[1], [0], [0], [1], [0, 0, 1, 1], [], []>} : vector<2x16xf32>, vector<16x48xf32>, vector<2x48xf32> -> vector<2x48xf32>
    %189 = vector.broadcast %3 : vector<1x48xf32> to vector<2x48xf32>
    %190 = arith.addf %188, %189 : vector<2x48xf32>
    %191 = vector.extract_strided_slice %166 {offsets = [0, 48], sizes = [2, 48], strides = [1, 1]} : vector<2x96xf32> to vector<2x48xf32>
    %192 = vector.extract_strided_slice %190 {offsets = [0, 0], sizes = [2, 32], strides = [1, 1]} : vector<2x48xf32> to vector<2x32xf32>
    %193 = vector.extract_strided_slice %191 {offsets = [0, 0], sizes = [2, 32], strides = [1, 1]} : vector<2x48xf32> to vector<2x32xf32>
    %194 = arith.addf %192, %193 : vector<2x32xf32>
    %195 = arith.negf %194 : vector<2x32xf32>
    %196 = math.exp %195 : vector<2x32xf32>
    %cst_37 = arith.constant 1.000000e+00 : f32
    %197 = vector.broadcast %cst_37 : f32 to vector<2x32xf32>
    %198 = arith.addf %197, %196 : vector<2x32xf32>
    %199 = arith.divf %197, %198 : vector<2x32xf32>
    %200 = vector.extract_strided_slice %199 {offsets = [0, 0], sizes = [2, 16], strides = [1, 1]} : vector<2x32xf32> to vector<2x16xf32>
    %201 = vector.extract_strided_slice %199 {offsets = [0, 16], sizes = [2, 16], strides = [1, 1]} : vector<2x32xf32> to vector<2x16xf32>
    %202 = vector.extract_strided_slice %190 {offsets = [0, 32], sizes = [2, 16], strides = [1, 1]} : vector<2x48xf32> to vector<2x16xf32>
    %203 = vector.extract_strided_slice %191 {offsets = [0, 32], sizes = [2, 16], strides = [1, 1]} : vector<2x48xf32> to vector<2x16xf32>
    %204 = arith.mulf %200, %203 : vector<2x16xf32>
    %205 = arith.addf %202, %204 : vector<2x16xf32>
    %206 = math.tanh %205 : vector<2x16xf32>
    %cst_38 = arith.constant 1.000000e+00 : f32
    %207 = vector.broadcast %cst_38 : f32 to vector<2x16xf32>
    %208 = arith.subf %207, %201 : vector<2x16xf32>
    %209 = arith.mulf %208, %206 : vector<2x16xf32>
    %210 = arith.mulf %201, %161 : vector<2x16xf32>
    %211 = arith.addf %209, %210 : vector<2x16xf32>
    %212 = vector.extract_strided_slice %9 {offsets = [8, 0], sizes = [2, 48], strides = [1, 1]} : vector<16x48xf32> to vector<2x48xf32>
    %213 = tpu.concatenate %187, %211 in 1 : vector<2x16xf32>, vector<2x16xf32> -> vector<2x32xf32>
    %cst_39 = arith.constant dense<0.000000e+00> : vector<2x96xf32>
    %214 = tpu.matmul %213, %0, %cst_39 {dimension_numbers = #tpu.dot_dimension_numbers<[1], [0], [0], [1], [0, 0, 1, 1], [], []>} : vector<2x32xf32>, vector<32x96xf32>, vector<2x96xf32> -> vector<2x96xf32>
    %215 = vector.broadcast %1 : vector<1x96xf32> to vector<2x96xf32>
    %216 = arith.addf %214, %215 : vector<2x96xf32>
    %217 = vector.extract_strided_slice %216 {offsets = [0, 0], sizes = [2, 48], strides = [1, 1]} : vector<2x96xf32> to vector<2x48xf32>
    %218 = vector.extract_strided_slice %212 {offsets = [0, 0], sizes = [2, 32], strides = [1, 1]} : vector<2x48xf32> to vector<2x32xf32>
    %219 = vector.extract_strided_slice %217 {offsets = [0, 0], sizes = [2, 32], strides = [1, 1]} : vector<2x48xf32> to vector<2x32xf32>
    %220 = arith.addf %218, %219 : vector<2x32xf32>
    %221 = arith.negf %220 : vector<2x32xf32>
    %222 = math.exp %221 : vector<2x32xf32>
    %cst_40 = arith.constant 1.000000e+00 : f32
    %223 = vector.broadcast %cst_40 : f32 to vector<2x32xf32>
    %224 = arith.addf %223, %222 : vector<2x32xf32>
    %225 = arith.divf %223, %224 : vector<2x32xf32>
    %226 = vector.extract_strided_slice %225 {offsets = [0, 0], sizes = [2, 16], strides = [1, 1]} : vector<2x32xf32> to vector<2x16xf32>
    %227 = vector.extract_strided_slice %225 {offsets = [0, 16], sizes = [2, 16], strides = [1, 1]} : vector<2x32xf32> to vector<2x16xf32>
    %228 = vector.extract_strided_slice %212 {offsets = [0, 32], sizes = [2, 16], strides = [1, 1]} : vector<2x48xf32> to vector<2x16xf32>
    %229 = vector.extract_strided_slice %217 {offsets = [0, 32], sizes = [2, 16], strides = [1, 1]} : vector<2x48xf32> to vector<2x16xf32>
    %230 = arith.mulf %226, %229 : vector<2x16xf32>
    %231 = arith.addf %228, %230 : vector<2x16xf32>
    %232 = math.tanh %231 : vector<2x16xf32>
    %cst_41 = arith.constant 1.000000e+00 : f32
    %233 = vector.broadcast %cst_41 : f32 to vector<2x16xf32>
    %234 = arith.subf %233, %227 : vector<2x16xf32>
    %235 = arith.mulf %234, %232 : vector<2x16xf32>
    %236 = arith.mulf %227, %187 : vector<2x16xf32>
    %237 = arith.addf %235, %236 : vector<2x16xf32>
    %cst_42 = arith.constant dense<0.000000e+00> : vector<2x48xf32>
    %238 = tpu.matmul %237, %2, %cst_42 {dimension_numbers = #tpu.dot_dimension_numbers<[1], [0], [0], [1], [0, 0, 1, 1], [], []>} : vector<2x16xf32>, vector<16x48xf32>, vector<2x48xf32> -> vector<2x48xf32>
    %239 = vector.broadcast %3 : vector<1x48xf32> to vector<2x48xf32>
    %240 = arith.addf %238, %239 : vector<2x48xf32>
    %241 = vector.extract_strided_slice %216 {offsets = [0, 48], sizes = [2, 48], strides = [1, 1]} : vector<2x96xf32> to vector<2x48xf32>
    %242 = vector.extract_strided_slice %240 {offsets = [0, 0], sizes = [2, 32], strides = [1, 1]} : vector<2x48xf32> to vector<2x32xf32>
    %243 = vector.extract_strided_slice %241 {offsets = [0, 0], sizes = [2, 32], strides = [1, 1]} : vector<2x48xf32> to vector<2x32xf32>
    %244 = arith.addf %242, %243 : vector<2x32xf32>
    %245 = arith.negf %244 : vector<2x32xf32>
    %246 = math.exp %245 : vector<2x32xf32>
    %cst_43 = arith.constant 1.000000e+00 : f32
    %247 = vector.broadcast %cst_43 : f32 to vector<2x32xf32>
    %248 = arith.addf %247, %246 : vector<2x32xf32>
    %249 = arith.divf %247, %248 : vector<2x32xf32>
    %250 = vector.extract_strided_slice %249 {offsets = [0, 0], sizes = [2, 16], strides = [1, 1]} : vector<2x32xf32> to vector<2x16xf32>
    %251 = vector.extract_strided_slice %249 {offsets = [0, 16], sizes = [2, 16], strides = [1, 1]} : vector<2x32xf32> to vector<2x16xf32>
    %252 = vector.extract_strided_slice %240 {offsets = [0, 32], sizes = [2, 16], strides = [1, 1]} : vector<2x48xf32> to vector<2x16xf32>
    %253 = vector.extract_strided_slice %241 {offsets = [0, 32], sizes = [2, 16], strides = [1, 1]} : vector<2x48xf32> to vector<2x16xf32>
    %254 = arith.mulf %250, %253 : vector<2x16xf32>
    %255 = arith.addf %252, %254 : vector<2x16xf32>
    %256 = math.tanh %255 : vector<2x16xf32>
    %cst_44 = arith.constant 1.000000e+00 : f32
    %257 = vector.broadcast %cst_44 : f32 to vector<2x16xf32>
    %258 = arith.subf %257, %251 : vector<2x16xf32>
    %259 = arith.mulf %258, %256 : vector<2x16xf32>
    %260 = arith.mulf %251, %211 : vector<2x16xf32>
    %261 = arith.addf %259, %260 : vector<2x16xf32>
    %262 = vector.extract_strided_slice %9 {offsets = [10, 0], sizes = [2, 48], strides = [1, 1]} : vector<16x48xf32> to vector<2x48xf32>
    %263 = tpu.concatenate %237, %261 in 1 : vector<2x16xf32>, vector<2x16xf32> -> vector<2x32xf32>
    %cst_45 = arith.constant dense<0.000000e+00> : vector<2x96xf32>
    %264 = tpu.matmul %263, %0, %cst_45 {dimension_numbers = #tpu.dot_dimension_numbers<[1], [0], [0], [1], [0, 0, 1, 1], [], []>} : vector<2x32xf32>, vector<32x96xf32>, vector<2x96xf32> -> vector<2x96xf32>
    %265 = vector.broadcast %1 : vector<1x96xf32> to vector<2x96xf32>
    %266 = arith.addf %264, %265 : vector<2x96xf32>
    %267 = vector.extract_strided_slice %266 {offsets = [0, 0], sizes = [2, 48], strides = [1, 1]} : vector<2x96xf32> to vector<2x48xf32>
    %268 = vector.extract_strided_slice %262 {offsets = [0, 0], sizes = [2, 32], strides = [1, 1]} : vector<2x48xf32> to vector<2x32xf32>
    %269 = vector.extract_strided_slice %267 {offsets = [0, 0], sizes = [2, 32], strides = [1, 1]} : vector<2x48xf32> to vector<2x32xf32>
    %270 = arith.addf %268, %269 : vector<2x32xf32>
    %271 = arith.negf %270 : vector<2x32xf32>
    %272 = math.exp %271 : vector<2x32xf32>
    %cst_46 = arith.constant 1.000000e+00 : f32
    %273 = vector.broadcast %cst_46 : f32 to vector<2x32xf32>
    %274 = arith.addf %273, %272 : vector<2x32xf32>
    %275 = arith.divf %273, %274 : vector<2x32xf32>
    %276 = vector.extract_strided_slice %275 {offsets = [0, 0], sizes = [2, 16], strides = [1, 1]} : vector<2x32xf32> to vector<2x16xf32>
    %277 = vector.extract_strided_slice %275 {offsets = [0, 16], sizes = [2, 16], strides = [1, 1]} : vector<2x32xf32> to vector<2x16xf32>
    %278 = vector.extract_strided_slice %262 {offsets = [0, 32], sizes = [2, 16], strides = [1, 1]} : vector<2x48xf32> to vector<2x16xf32>
    %279 = vector.extract_strided_slice %267 {offsets = [0, 32], sizes = [2, 16], strides = [1, 1]} : vector<2x48xf32> to vector<2x16xf32>
    %280 = arith.mulf %276, %279 : vector<2x16xf32>
    %281 = arith.addf %278, %280 : vector<2x16xf32>
    %282 = math.tanh %281 : vector<2x16xf32>
    %cst_47 = arith.constant 1.000000e+00 : f32
    %283 = vector.broadcast %cst_47 : f32 to vector<2x16xf32>
    %284 = arith.subf %283, %277 : vector<2x16xf32>
    %285 = arith.mulf %284, %282 : vector<2x16xf32>
    %286 = arith.mulf %277, %237 : vector<2x16xf32>
    %287 = arith.addf %285, %286 : vector<2x16xf32>
    %cst_48 = arith.constant dense<0.000000e+00> : vector<2x48xf32>
    %288 = tpu.matmul %287, %2, %cst_48 {dimension_numbers = #tpu.dot_dimension_numbers<[1], [0], [0], [1], [0, 0, 1, 1], [], []>} : vector<2x16xf32>, vector<16x48xf32>, vector<2x48xf32> -> vector<2x48xf32>
    %289 = vector.broadcast %3 : vector<1x48xf32> to vector<2x48xf32>
    %290 = arith.addf %288, %289 : vector<2x48xf32>
    %291 = vector.extract_strided_slice %266 {offsets = [0, 48], sizes = [2, 48], strides = [1, 1]} : vector<2x96xf32> to vector<2x48xf32>
    %292 = vector.extract_strided_slice %290 {offsets = [0, 0], sizes = [2, 32], strides = [1, 1]} : vector<2x48xf32> to vector<2x32xf32>
    %293 = vector.extract_strided_slice %291 {offsets = [0, 0], sizes = [2, 32], strides = [1, 1]} : vector<2x48xf32> to vector<2x32xf32>
    %294 = arith.addf %292, %293 : vector<2x32xf32>
    %295 = arith.negf %294 : vector<2x32xf32>
    %296 = math.exp %295 : vector<2x32xf32>
    %cst_49 = arith.constant 1.000000e+00 : f32
    %297 = vector.broadcast %cst_49 : f32 to vector<2x32xf32>
    %298 = arith.addf %297, %296 : vector<2x32xf32>
    %299 = arith.divf %297, %298 : vector<2x32xf32>
    %300 = vector.extract_strided_slice %299 {offsets = [0, 0], sizes = [2, 16], strides = [1, 1]} : vector<2x32xf32> to vector<2x16xf32>
    %301 = vector.extract_strided_slice %299 {offsets = [0, 16], sizes = [2, 16], strides = [1, 1]} : vector<2x32xf32> to vector<2x16xf32>
    %302 = vector.extract_strided_slice %290 {offsets = [0, 32], sizes = [2, 16], strides = [1, 1]} : vector<2x48xf32> to vector<2x16xf32>
    %303 = vector.extract_strided_slice %291 {offsets = [0, 32], sizes = [2, 16], strides = [1, 1]} : vector<2x48xf32> to vector<2x16xf32>
    %304 = arith.mulf %300, %303 : vector<2x16xf32>
    %305 = arith.addf %302, %304 : vector<2x16xf32>
    %306 = math.tanh %305 : vector<2x16xf32>
    %cst_50 = arith.constant 1.000000e+00 : f32
    %307 = vector.broadcast %cst_50 : f32 to vector<2x16xf32>
    %308 = arith.subf %307, %301 : vector<2x16xf32>
    %309 = arith.mulf %308, %306 : vector<2x16xf32>
    %310 = arith.mulf %301, %261 : vector<2x16xf32>
    %311 = arith.addf %309, %310 : vector<2x16xf32>
    %312 = vector.extract_strided_slice %9 {offsets = [12, 0], sizes = [2, 48], strides = [1, 1]} : vector<16x48xf32> to vector<2x48xf32>
    %313 = tpu.concatenate %287, %311 in 1 : vector<2x16xf32>, vector<2x16xf32> -> vector<2x32xf32>
    %cst_51 = arith.constant dense<0.000000e+00> : vector<2x96xf32>
    %314 = tpu.matmul %313, %0, %cst_51 {dimension_numbers = #tpu.dot_dimension_numbers<[1], [0], [0], [1], [0, 0, 1, 1], [], []>} : vector<2x32xf32>, vector<32x96xf32>, vector<2x96xf32> -> vector<2x96xf32>
    %315 = vector.broadcast %1 : vector<1x96xf32> to vector<2x96xf32>
    %316 = arith.addf %314, %315 : vector<2x96xf32>
    %317 = vector.extract_strided_slice %316 {offsets = [0, 0], sizes = [2, 48], strides = [1, 1]} : vector<2x96xf32> to vector<2x48xf32>
    %318 = vector.extract_strided_slice %312 {offsets = [0, 0], sizes = [2, 32], strides = [1, 1]} : vector<2x48xf32> to vector<2x32xf32>
    %319 = vector.extract_strided_slice %317 {offsets = [0, 0], sizes = [2, 32], strides = [1, 1]} : vector<2x48xf32> to vector<2x32xf32>
    %320 = arith.addf %318, %319 : vector<2x32xf32>
    %321 = arith.negf %320 : vector<2x32xf32>
    %322 = math.exp %321 : vector<2x32xf32>
    %cst_52 = arith.constant 1.000000e+00 : f32
    %323 = vector.broadcast %cst_52 : f32 to vector<2x32xf32>
    %324 = arith.addf %323, %322 : vector<2x32xf32>
    %325 = arith.divf %323, %324 : vector<2x32xf32>
    %326 = vector.extract_strided_slice %325 {offsets = [0, 0], sizes = [2, 16], strides = [1, 1]} : vector<2x32xf32> to vector<2x16xf32>
    %327 = vector.extract_strided_slice %325 {offsets = [0, 16], sizes = [2, 16], strides = [1, 1]} : vector<2x32xf32> to vector<2x16xf32>
    %328 = vector.extract_strided_slice %312 {offsets = [0, 32], sizes = [2, 16], strides = [1, 1]} : vector<2x48xf32> to vector<2x16xf32>
    %329 = vector.extract_strided_slice %317 {offsets = [0, 32], sizes = [2, 16], strides = [1, 1]} : vector<2x48xf32> to vector<2x16xf32>
    %330 = arith.mulf %326, %329 : vector<2x16xf32>
    %331 = arith.addf %328, %330 : vector<2x16xf32>
    %332 = math.tanh %331 : vector<2x16xf32>
    %cst_53 = arith.constant 1.000000e+00 : f32
    %333 = vector.broadcast %cst_53 : f32 to vector<2x16xf32>
    %334 = arith.subf %333, %327 : vector<2x16xf32>
    %335 = arith.mulf %334, %332 : vector<2x16xf32>
    %336 = arith.mulf %327, %287 : vector<2x16xf32>
    %337 = arith.addf %335, %336 : vector<2x16xf32>
    %cst_54 = arith.constant dense<0.000000e+00> : vector<2x48xf32>
    %338 = tpu.matmul %337, %2, %cst_54 {dimension_numbers = #tpu.dot_dimension_numbers<[1], [0], [0], [1], [0, 0, 1, 1], [], []>} : vector<2x16xf32>, vector<16x48xf32>, vector<2x48xf32> -> vector<2x48xf32>
    %339 = vector.broadcast %3 : vector<1x48xf32> to vector<2x48xf32>
    %340 = arith.addf %338, %339 : vector<2x48xf32>
    %341 = vector.extract_strided_slice %316 {offsets = [0, 48], sizes = [2, 48], strides = [1, 1]} : vector<2x96xf32> to vector<2x48xf32>
    %342 = vector.extract_strided_slice %340 {offsets = [0, 0], sizes = [2, 32], strides = [1, 1]} : vector<2x48xf32> to vector<2x32xf32>
    %343 = vector.extract_strided_slice %341 {offsets = [0, 0], sizes = [2, 32], strides = [1, 1]} : vector<2x48xf32> to vector<2x32xf32>
    %344 = arith.addf %342, %343 : vector<2x32xf32>
    %345 = arith.negf %344 : vector<2x32xf32>
    %346 = math.exp %345 : vector<2x32xf32>
    %cst_55 = arith.constant 1.000000e+00 : f32
    %347 = vector.broadcast %cst_55 : f32 to vector<2x32xf32>
    %348 = arith.addf %347, %346 : vector<2x32xf32>
    %349 = arith.divf %347, %348 : vector<2x32xf32>
    %350 = vector.extract_strided_slice %349 {offsets = [0, 0], sizes = [2, 16], strides = [1, 1]} : vector<2x32xf32> to vector<2x16xf32>
    %351 = vector.extract_strided_slice %349 {offsets = [0, 16], sizes = [2, 16], strides = [1, 1]} : vector<2x32xf32> to vector<2x16xf32>
    %352 = vector.extract_strided_slice %340 {offsets = [0, 32], sizes = [2, 16], strides = [1, 1]} : vector<2x48xf32> to vector<2x16xf32>
    %353 = vector.extract_strided_slice %341 {offsets = [0, 32], sizes = [2, 16], strides = [1, 1]} : vector<2x48xf32> to vector<2x16xf32>
    %354 = arith.mulf %350, %353 : vector<2x16xf32>
    %355 = arith.addf %352, %354 : vector<2x16xf32>
    %356 = math.tanh %355 : vector<2x16xf32>
    %cst_56 = arith.constant 1.000000e+00 : f32
    %357 = vector.broadcast %cst_56 : f32 to vector<2x16xf32>
    %358 = arith.subf %357, %351 : vector<2x16xf32>
    %359 = arith.mulf %358, %356 : vector<2x16xf32>
    %360 = arith.mulf %351, %311 : vector<2x16xf32>
    %361 = arith.addf %359, %360 : vector<2x16xf32>
    %362 = vector.extract_strided_slice %9 {offsets = [14, 0], sizes = [2, 48], strides = [1, 1]} : vector<16x48xf32> to vector<2x48xf32>
    %363 = tpu.concatenate %337, %361 in 1 : vector<2x16xf32>, vector<2x16xf32> -> vector<2x32xf32>
    %cst_57 = arith.constant dense<0.000000e+00> : vector<2x96xf32>
    %364 = tpu.matmul %363, %0, %cst_57 {dimension_numbers = #tpu.dot_dimension_numbers<[1], [0], [0], [1], [0, 0, 1, 1], [], []>} : vector<2x32xf32>, vector<32x96xf32>, vector<2x96xf32> -> vector<2x96xf32>
    %365 = vector.broadcast %1 : vector<1x96xf32> to vector<2x96xf32>
    %366 = arith.addf %364, %365 : vector<2x96xf32>
    %367 = vector.extract_strided_slice %366 {offsets = [0, 0], sizes = [2, 48], strides = [1, 1]} : vector<2x96xf32> to vector<2x48xf32>
    %368 = vector.extract_strided_slice %362 {offsets = [0, 0], sizes = [2, 32], strides = [1, 1]} : vector<2x48xf32> to vector<2x32xf32>
    %369 = vector.extract_strided_slice %367 {offsets = [0, 0], sizes = [2, 32], strides = [1, 1]} : vector<2x48xf32> to vector<2x32xf32>
    %370 = arith.addf %368, %369 : vector<2x32xf32>
    %371 = arith.negf %370 : vector<2x32xf32>
    %372 = math.exp %371 : vector<2x32xf32>
    %cst_58 = arith.constant 1.000000e+00 : f32
    %373 = vector.broadcast %cst_58 : f32 to vector<2x32xf32>
    %374 = arith.addf %373, %372 : vector<2x32xf32>
    %375 = arith.divf %373, %374 : vector<2x32xf32>
    %376 = vector.extract_strided_slice %375 {offsets = [0, 0], sizes = [2, 16], strides = [1, 1]} : vector<2x32xf32> to vector<2x16xf32>
    %377 = vector.extract_strided_slice %375 {offsets = [0, 16], sizes = [2, 16], strides = [1, 1]} : vector<2x32xf32> to vector<2x16xf32>
    %378 = vector.extract_strided_slice %362 {offsets = [0, 32], sizes = [2, 16], strides = [1, 1]} : vector<2x48xf32> to vector<2x16xf32>
    %379 = vector.extract_strided_slice %367 {offsets = [0, 32], sizes = [2, 16], strides = [1, 1]} : vector<2x48xf32> to vector<2x16xf32>
    %380 = arith.mulf %376, %379 : vector<2x16xf32>
    %381 = arith.addf %378, %380 : vector<2x16xf32>
    %382 = math.tanh %381 : vector<2x16xf32>
    %cst_59 = arith.constant 1.000000e+00 : f32
    %383 = vector.broadcast %cst_59 : f32 to vector<2x16xf32>
    %384 = arith.subf %383, %377 : vector<2x16xf32>
    %385 = arith.mulf %384, %382 : vector<2x16xf32>
    %386 = arith.mulf %377, %337 : vector<2x16xf32>
    %387 = arith.addf %385, %386 : vector<2x16xf32>
    %cst_60 = arith.constant dense<0.000000e+00> : vector<2x48xf32>
    %388 = tpu.matmul %387, %2, %cst_60 {dimension_numbers = #tpu.dot_dimension_numbers<[1], [0], [0], [1], [0, 0, 1, 1], [], []>} : vector<2x16xf32>, vector<16x48xf32>, vector<2x48xf32> -> vector<2x48xf32>
    %389 = vector.broadcast %3 : vector<1x48xf32> to vector<2x48xf32>
    %390 = arith.addf %388, %389 : vector<2x48xf32>
    %391 = vector.extract_strided_slice %366 {offsets = [0, 48], sizes = [2, 48], strides = [1, 1]} : vector<2x96xf32> to vector<2x48xf32>
    %392 = vector.extract_strided_slice %390 {offsets = [0, 0], sizes = [2, 32], strides = [1, 1]} : vector<2x48xf32> to vector<2x32xf32>
    %393 = vector.extract_strided_slice %391 {offsets = [0, 0], sizes = [2, 32], strides = [1, 1]} : vector<2x48xf32> to vector<2x32xf32>
    %394 = arith.addf %392, %393 : vector<2x32xf32>
    %395 = arith.negf %394 : vector<2x32xf32>
    %396 = math.exp %395 : vector<2x32xf32>
    %cst_61 = arith.constant 1.000000e+00 : f32
    %397 = vector.broadcast %cst_61 : f32 to vector<2x32xf32>
    %398 = arith.addf %397, %396 : vector<2x32xf32>
    %399 = arith.divf %397, %398 : vector<2x32xf32>
    %400 = vector.extract_strided_slice %399 {offsets = [0, 0], sizes = [2, 16], strides = [1, 1]} : vector<2x32xf32> to vector<2x16xf32>
    %401 = vector.extract_strided_slice %399 {offsets = [0, 16], sizes = [2, 16], strides = [1, 1]} : vector<2x32xf32> to vector<2x16xf32>
    %402 = vector.extract_strided_slice %390 {offsets = [0, 32], sizes = [2, 16], strides = [1, 1]} : vector<2x48xf32> to vector<2x16xf32>
    %403 = vector.extract_strided_slice %391 {offsets = [0, 32], sizes = [2, 16], strides = [1, 1]} : vector<2x48xf32> to vector<2x16xf32>
    %404 = arith.mulf %400, %403 : vector<2x16xf32>
    %405 = arith.addf %402, %404 : vector<2x16xf32>
    %406 = math.tanh %405 : vector<2x16xf32>
    %cst_62 = arith.constant 1.000000e+00 : f32
    %407 = vector.broadcast %cst_62 : f32 to vector<2x16xf32>
    %408 = arith.subf %407, %401 : vector<2x16xf32>
    %409 = arith.mulf %408, %406 : vector<2x16xf32>
    %410 = arith.mulf %401, %361 : vector<2x16xf32>
    %411 = arith.addf %409, %410 : vector<2x16xf32>
    %412 = vector.shape_cast %61 : vector<2x16xf32> to vector<2x1x16xf32>
    %413 = vector.shape_cast %111 : vector<2x16xf32> to vector<2x1x16xf32>
    %414 = vector.shape_cast %161 : vector<2x16xf32> to vector<2x1x16xf32>
    %415 = vector.shape_cast %211 : vector<2x16xf32> to vector<2x1x16xf32>
    %416 = vector.shape_cast %261 : vector<2x16xf32> to vector<2x1x16xf32>
    %417 = vector.shape_cast %311 : vector<2x16xf32> to vector<2x1x16xf32>
    %418 = vector.shape_cast %361 : vector<2x16xf32> to vector<2x1x16xf32>
    %419 = vector.shape_cast %411 : vector<2x16xf32> to vector<2x1x16xf32>
    %420 = tpu.concatenate %412, %413, %414, %415, %416, %417, %418, %419 in 1 : vector<2x1x16xf32>, vector<2x1x16xf32>, vector<2x1x16xf32>, vector<2x1x16xf32>, vector<2x1x16xf32>, vector<2x1x16xf32>, vector<2x1x16xf32>, vector<2x1x16xf32> -> vector<2x8x16xf32>
    %421 = math.tanh %420 : vector<2x8x16xf32>
    %c0_63 = arith.constant 0 : index
    %c0_64 = arith.constant 0 : index
    %422 = vector.load %arg7[%c0_63, %c0_64] : memref<1x16xf32, #tpu.memory_space<vmem>>, vector<1x16xf32>
    %423 = vector.shape_cast %422 : vector<1x16xf32> to vector<1x1x16xf32>
    %424 = vector.broadcast %423 : vector<1x1x16xf32> to vector<2x8x16xf32>
    %425 = arith.mulf %421, %424 : vector<2x8x16xf32>
    %cst_65 = arith.constant dense<0.000000e+00> : vector<2x8xf32>
    %426 = vector.multi_reduction <add>, %425, %cst_65 [2] : vector<2x8x16xf32> to vector<2x8xf32>
    %cst_66 = arith.constant dense<0xFF800000> : vector<2xf32>
    %427 = vector.multi_reduction <maximumf>, %426, %cst_66 [1] : vector<2x8xf32> to vector<2xf32>
    %428 = vector.shape_cast %427 : vector<2xf32> to vector<2x1xf32>
    %429 = vector.broadcast %428 : vector<2x1xf32> to vector<2x8xf32>
    %430 = arith.subf %426, %429 : vector<2x8xf32>
    %431 = math.exp %430 : vector<2x8xf32>
    %cst_67 = arith.constant dense<0.000000e+00> : vector<2xf32>
    %432 = vector.multi_reduction <add>, %431, %cst_67 [1] : vector<2x8xf32> to vector<2xf32>
    %433 = vector.shape_cast %432 : vector<2xf32> to vector<2x1xf32>
    %434 = tpu.reciprocal %433 {approx = true} : vector<2x1xf32> -> vector<2x1xf32>
    %435 = vector.broadcast %434 : vector<2x1xf32> to vector<2x8xf32>
    %436 = arith.mulf %431, %435 : vector<2x8xf32>
    %c0_68 = arith.constant 0 : index
    %c0_69 = arith.constant 0 : index
    %437 = vector.load %arg11[%c0_68, %c0_69] : memref<2x8xf32, #tpu.memory_space<vmem>>, vector<2x8xf32>
    tpu.vector_store %arg11[%c0_68, %c0_69], %436 {strides = array<i32>} : memref<2x8xf32, #tpu.memory_space<vmem>>, vector<2x8xf32>,
    %438 = vector.shape_cast %436 : vector<2x8xf32> to vector<2x8x1xf32>
    %439 = vector.broadcast %438 : vector<2x8x1xf32> to vector<2x8x16xf32>
    %440 = arith.mulf %439, %420 : vector<2x8x16xf32>
    %cst_70 = arith.constant dense<0.000000e+00> : vector<2x16xf32>
    %441 = vector.multi_reduction <add>, %440, %cst_70 [1] : vector<2x8x16xf32> to vector<2x16xf32>
    %442 = math.tanh %441 : vector<2x16xf32>
    %c0_71 = arith.constant 0 : index
    %c0_72 = arith.constant 0 : index
    %443 = vector.load %arg8[%c0_71, %c0_72] : memref<16x1xf32, #tpu.memory_space<vmem>>, vector<16x1xf32>
    %cst_73 = arith.constant dense<0.000000e+00> : vector<2x1xf32>
    %444 = tpu.matmul %442, %443, %cst_73 {dimension_numbers = #tpu.dot_dimension_numbers<[1], [0], [0], [1], [0, 0, 1, 1], [], []>} : vector<2x16xf32>, vector<16x1xf32>, vector<2x1xf32> -> vector<2x1xf32>
    %c0_74 = arith.constant 0 : index
    %c0_75 = arith.constant 0 : index
    %445 = vector.load %arg9[%c0_74, %c0_75] : memref<1x1xf32, #tpu.memory_space<vmem>>, vector<1x1xf32>
    %446 = vector.broadcast %445 : vector<1x1xf32> to vector<2x1xf32>
    %447 = arith.addf %444, %446 : vector<2x1xf32>
    %c0_76 = arith.constant 0 : index
    %c0_77 = arith.constant 0 : index
    %448 = vector.load %arg10[%c0_76, %c0_77] : memref<2x1xf32, #tpu.memory_space<vmem>>, vector<2x1xf32>
    tpu.vector_store %arg10[%c0_76, %c0_77], %447 {strides = array<i32>} : memref<2x1xf32, #tpu.memory_space<vmem>>, vector<2x1xf32>,
    return
  }
}

</mosaic_0001>

<bundles_post_ra>
// kernel: gru_attention_forward.1
= control target key start
LH: loop header
LB: loop body
LE: loop exit
PB: predicated region body
PF: predicated region fallthrough
CT: control target
= control target key end

     0   :  { %s2043_s0 = inlined_call_operand.vmem [shape: f32[16,1], index: 0, kind: input, shape index: {}]   ;;  %s2044_s1 = inlined_call_operand.vmem [shape: f32[1,48], index: 1, kind: input, shape index: {}]   ;;  %s2045_s2 = inlined_call_operand.vmem [shape: f32[1,48], index: 2, kind: input, shape index: {}]   ;;  %s2046_s3 = inlined_call_operand.vmem [shape: f32[32,96], index: 3, kind: input, shape index: {}]   ;;  %s2047_s4 = inlined_call_operand.vmem [shape: f32[1,96], index: 4, kind: input, shape index: {}]   ;;  %s2048_s5 = inlined_call_operand.vmem [shape: f32[16,48], index: 5, kind: input, shape index: {}]   ;;  %s2049_s6 = inlined_call_operand.vmem [shape: f32[1,48], index: 6, kind: input, shape index: {}]   ;;  %s2050_s7 = inlined_call_operand.vmem [shape: f32[1,16], index: 7, kind: input, shape index: {}]   ;;  %s2051_s8 = inlined_call_operand.vmem [shape: f32[16,1], index: 8, kind: input, shape index: {}]   ;;  %s2052_s9 = inlined_call_operand.<no memory space> [shape: f32[1,1], index: 9, kind: input, shape index: {}]   ;;  %s2053_s10 = inlined_call_operand.vmem [shape: f32[2,1], index: 10, kind: output, shape index: {0}]   ;;  %s2054_s11 = inlined_call_operand.hbm [shape: f32[2,8], index: 11, kind: output, shape index: {1}]  }
   0x1   :  { %v17_v0 = vstv %s2052_s9 }
   0x2   :  { %18 = vst [vmem:[#allocation2] sm:$0x1] %v17_v0 }
   0x3   :  { %v1681_v1 = vld [vmem:[%s2046_s3 + $0x18] sm:$0xff]  ;;  %v1686_v2 = vld [vmem:[%s2046_s3 + $0x10] sm:$0xff]  ;;  %vm62_vm0 = vcmask 1040384   ;;  %vm55_vm1 = vcmask 7168   ;;  %v50_v3 = vld [vmem:[%s2044_s1] sm:$0x1] }
   0x4   :  { %108 = vmatpush.msra.mxu1 %v1681_v1  ;;  %v48_v4 = vld [vmem:[%s2043_s0] sm:$0xff]  ;;  %242 = vmatpush.msra.mxu3 %v1681_v1  ;;  %v1699_v5 = vld [vmem:[%s2046_s3 + $0x8] sm:$0xff] }
   0x5   :  { %1416 = vmatpush.msk.msra.mxu0 %vm62_vm0, %v50_v3  ;;  %v1707_v6 = vld [vmem:[%s2046_s3] sm:$0xff] }
   0x6   :  { %109 = vmatpush.msra.mxu1 %v1686_v2  ;;  %1417 = vmatmul.msk.f32.vlgmr.msra.gmra.mxu0 %vm55_vm1, %v48_v4 }
   0x7   :  { %243 = vmatpush.msra.mxu3 %v1686_v2  ;;  %524 = vmatpush.msrb.mxu0 %v1681_v1 }
   0x8   :  { %19 = vsyncpa [#allocation4], 0  ;;  %110 = vmatpush.msra.mxu1 %v1699_v5  ;;  %v1606_v7 = vmov 0.0   ;;  %v1733_v8 = vld [vmem:[%s2047_s4] ss:$0 sm:$0xff]  ;;  %s1607_s30 = smov 80  }
   0x9   :  { %244 = vmatpush.msra.mxu3 %v1699_v5  ;;  %525 = vmatpush.msrb.mxu0 %v1686_v2  ;;  %s1608_s12 = smov 96   ;;  %s1609_s13 = smov 48   ;;  %v1742_v11 = vld [vmem:[%s2045_s2] ss:$0 sm:$0xff]  ;;  %v1754_v33 = vld [vmem:[%s2048_s5 + $0x8] sm:$0xff]  ;;  %vm161_vm6 = vcmask 130048  }
   0xa   :  { %111 = vmatpush.msra.mxu1 %v1707_v6  ;;  %s1610_s2 = smov 32   ;;  %s1611_s16 = smov 112   ;;  %v1759_v34 = vld [vmem:[%s2048_s5] sm:$0xff]  ;;  %178 = vmatpush.msra.mxu2 %v1754_v33  ;;  %vm92_vm11 = vcmask 261120  }
   0xb   :  { %112 = vmatmul.f32.vlgmr.msra.gmra.mxu1 %v1606_v7  ;;  %245 = vmatpush.msra.mxu3 %v1707_v6  ;;  %v1777_v41 = vld [vmem:[%s2049_s6] ss:$0 sm:$0xff]  ;;  %s1612_s26 = smov 16  }
   0xc   :  { %383 = vmatpush.msrb.mxu1 %v1681_v1  ;;  %526 = vmatpush.msrb.mxu0 %v1699_v5 }
   0xd   :  { %454 = vmatpush.msrb.mxu3 %v1754_v33  ;;  %179 = vmatpush.msra.mxu2 %v1759_v34 }
   0xe   :  { %384 = vmatpush.msrb.mxu1 %v1686_v2  ;;  %527 = vmatpush.msrb.mxu0 %v1707_v6 }
   0xf   :  { %455 = vmatpush.msrb.mxu3 %v1759_v34  ;;  %313 = vmatpush.msrb.mxu2 %v1754_v33 }
  0x10   :  { %796 = vmatpush.msra.mxu0 %v1681_v1  ;;  %385 = vmatpush.msrb.mxu1 %v1699_v5 }
  0x11   :  { %314 = vmatpush.msrb.mxu2 %v1759_v34 }
  0x12   :  { %797 = vmatpush.msra.mxu0 %v1686_v2  ;;  %386 = vmatpush.msrb.mxu1 %v1707_v6 }
  0x14   :  { %665 = vmatpush.msra.mxu1 %v1681_v1  ;;  %798 = vmatpush.msra.mxu0 %v1699_v5 }
  0x16   :  { %666 = vmatpush.msra.mxu1 %v1686_v2  ;;  %799 = vmatpush.msra.mxu0 %v1707_v6 }
  0x18   :  { %667 = vmatpush.msra.mxu1 %v1699_v5 }
  0x1a   :  { %668 = vmatpush.msra.mxu1 %v1707_v6 }
  0x83   :  { %v83_v12 = vpop.f32.mrf.mxu0 }
  0x84   :  { %v1745_v13 = vadd.f32 %v1742_v11, %v83_v12 }
  0x88   :  { %v113_v9 = vpop.f32.mrf.mxu1 }
  0x89   :  { %v114_v10 = vadd.f32 %v1733_v8, %v113_v9 }
  0x8b   :  { %184 = vrot.lane.b32.xlu2 %v114_v10, %s1607_s30  ;;  %137 = vrot.lane.b32.xlu0 %v114_v10, %s1608_s12  ;;  %v116_v14 = vadd.f32 %v114_v10, %v1745_v13 }
  0x8d   :  { %v1419_v15 = vmul.f32 -1.442695, %v116_v14 }
  0x8f   :  { %1468 = vpow2.f32 %v1419_v15 }
  0x93   :  { %207 = vrot.lane.b32.xlu2 %v114_v10, %s1609_s13 }
  0x95   :  { %v1469_v16 = vpop.eup %1468 }
  0x96   :  { %v120_v17 = vadd.f32 1.0, %v1469_v16 }
  0x98   :  { %1470 = vrcp.f32 %v120_v17  ;;  %v132_v23 = vand.u32 2147483648, %v120_v17  ;;  %vm126_vm3 = vweird.f32 %v120_v17  ;;  %v130_v24 = vand.u32 2147483647, %v120_v17 }
  0x9a   :  { %v133_v26 = vor.u32 1.1754944e-38, %v132_v23  ;;  %vm131_vm5 = vcmp.eq.f32.partialorder %v130_v24, 8.507059e+37 }
  0x9e   :  { %v1471_v18 = vpop.eup %1470 }
  0x9f   :  { %v122_v19 = vmul.f32 %v1471_v18, %v120_v17  ;;  %vm127_vm2 = vweird.f32 %v1471_v18 }
  0xa0   :  { %vm128_vm4 = vmor %vm126_vm3, %vm127_vm2 }
  0xa1   :  { %v123_v20 = vsub.f32 1.0, %v122_v19 }
  0xa3   :  { %v124_v21 = vmul.f32 %v1471_v18, %v123_v20 }
  0xa5   :  { %v125_v22 = vadd.f32 %v1471_v18, %v124_v21 }
  0xa7   :  { %v129_v25 = vsel %vm128_vm4, %v1471_v18, %v125_v22 }
  0xa8   :  { %v134_v28 = vsel %vm131_vm5, %v133_v26, %v129_v25 }
  0xa9   :  { %v147_v35 = vsub.f32 1.0, %v134_v28  ;;  %v153_v37 = vmul.f32 0.0, %v134_v28 }
  0xe5   :  { %v185_v44 = vpop.permute.xlu2 %184 }
  0xed   :  { %v208_v58 = vpop.permute.xlu2 %207 }
  0xfd   :  { %v138_v27 = vpop.permute.xlu0 %137 }
  0xfe   :  { %v140_v29 = vmul.f32 %v138_v27, %v134_v28 }
 0x100   :  { %142 = vrot.lane.b32.xlu0 %v140_v29, %s1610_s2 }
 0x172   :  { %v143_v30 = vpop.permute.xlu0 %142 }
 0x173   :  { %v145_v31 = vadd.f32 %v143_v30, %v1745_v13 }
 0x175   :  { %1472 = vtanh.f32 %v145_v31 }
 0x17b   :  { %v1473_v32 = vpop.eup %1472 }
 0x17c   :  { %149 = vrot.lane.b32.xlu1 %v1473_v32, %s1611_s16 }
 0x1ee   :  { %v150_v36 = vpop.permute.xlu1 %149 }
 0x1ef   :  { %v152_v38 = vmul.f32 %v150_v36, %v147_v35 }
 0x1f1   :  { %v1767_v39 = vadd.f32 %v153_v37, %v152_v38 }
 0x1f3   :  { %159 = vrot.lane.b32.xlu1 %v1767_v39, %s1611_s16  ;;  %v289_v28 = vrot.slane %v1767_v39, 6 }
 0x265   :  { %v160_v40 = vpop.permute.xlu1 %159 }
 0x266   :  { %1420 = vmatmul.msk.f32.vlgmr.msra.gmra.mxu2 %vm161_vm6, %v160_v40 }
 0x267   :  { %595 = vmatpush.msra.mxu2 %v1754_v33 }
 0x269   :  { %596 = vmatpush.msra.mxu2 %v1759_v34 }
 0x2e9   :  { %v181_v42 = vpop.f32.mrf.mxu2 }
 0x2ea   :  { %v182_v43 = vadd.f32 %v1777_v41, %v181_v42 }
 0x2ec   :  { %v187_v45 = vadd.f32 %v185_v44, %v182_v43 }
 0x2ee   :  { %v1421_v46 = vmul.f32 -1.442695, %v187_v45 }
 0x2f0   :  { %1474 = vpow2.f32 %v1421_v46 }
 0x2f6   :  { %v1475_v47 = vpop.eup %1474 }
 0x2f7   :  { %v191_v48 = vadd.f32 1.0, %v1475_v47 }
 0x2f9   :  { %1476 = vrcp.f32 %v191_v48  ;;  %v203_v52 = vand.u32 2147483648, %v191_v48  ;;  %v201_v54 = vand.u32 2147483647, %v191_v48  ;;  %vm197_vm8 = vweird.f32 %v191_v48 }
 0x2fb   :  { %v204_v56 = vor.u32 1.1754944e-38, %v203_v52  ;;  %vm202_vm10 = vcmp.eq.f32.partialorder %v201_v54, 8.507059e+37 }
 0x2ff   :  { %v1477_v49 = vpop.eup %1476 }
 0x300   :  { %v193_v50 = vmul.f32 %v1477_v49, %v191_v48  ;;  %vm198_vm7 = vweird.f32 %v1477_v49 }
 0x301   :  { %vm199_vm9 = vmor %vm197_vm8, %vm198_vm7 }
 0x302   :  { %v194_v51 = vsub.f32 1.0, %v193_v50 }
 0x304   :  { %v195_v53 = vmul.f32 %v1477_v49, %v194_v51 }
 0x306   :  { %v196_v55 = vadd.f32 %v1477_v49, %v195_v53 }
 0x308   :  { %v200_v57 = vsel %vm199_vm9, %v1477_v49, %v196_v55 }
 0x309   :  { %v205_v59 = vsel %vm202_vm10, %v204_v56, %v200_v57 }
 0x30a   :  { %v210_v60 = vmul.f32 %v208_v58, %v205_v59  ;;  %v217_v0 = vsub.f32 1.0, %v205_v59  ;;  %v223_v4 = vmul.f32 0.0, %v205_v59 }
 0x30c   :  { %212 = vrot.lane.b32.xlu0 %v210_v60, %s1610_s2 }
 0x37e   :  { %v213_v61 = vpop.permute.xlu0 %212 }
 0x37f   :  { %v215_v62 = vadd.f32 %v213_v61, %v182_v43 }
 0x381   :  { %1478 = vtanh.f32 %v215_v62 }
 0x387   :  { %v1479_v63 = vpop.eup %1478 }
 0x388   :  { %219 = vrot.lane.b32.xlu1 %v1479_v63, %s1611_s16 }
 0x3fa   :  { %v220_v3 = vpop.permute.xlu1 %219 }
 0x3fb   :  { %v222_v7 = vmul.f32 %v220_v3, %v217_v0 }
 0x3fd   :  { %v1782_v9 = vadd.f32 %v223_v4, %v222_v7 }
 0x3ff   :  { %v226_v10 = vsel %vm161_vm6, %v160_v40, %v1782_v9 }
 0x400   :  { %1422 = vmatmul.msk.f32.vlgmr.msra.gmra.mxu3 %vm92_vm11, %v226_v10 }
 0x401   :  { %732 = vmatpush.msra.mxu3 %v1754_v33 }
 0x403   :  { %733 = vmatpush.msra.mxu3 %v1759_v34 }
 0x483   :  { %v247_v12 = vpop.f32.mrf.mxu3 }
 0x484   :  { %v248_v14 = vadd.f32 %v1733_v8, %v247_v12 }
 0x486   :  { %v251_v15 = vrot.slane %v248_v14, 6 }
 0x488   :  { %273 = vrot.lane.b32.xlu2 %v251_v15, %s1608_s12  ;;  %v253_v16 = vadd.f32 %v251_v15, %v1745_v13 }
 0x48a   :  { %v1423_v17 = vmul.f32 -1.442695, %v253_v16 }
 0x48c   :  { %1480 = vpow2.f32 %v1423_v17 }
 0x492   :  { %v1481_v18 = vpop.eup %1480 }
 0x493   :  { %v257_v19 = vadd.f32 1.0, %v1481_v18 }
 0x495   :  { %1482 = vrcp.f32 %v257_v19  ;;  %v269_v23 = vand.u32 2147483648, %v257_v19  ;;  %v267_v25 = vand.u32 2147483647, %v257_v19  ;;  %vm263_vm13 = vweird.f32 %v257_v19 }
 0x497   :  { %v270_v27 = vor.u32 1.1754944e-38, %v269_v23  ;;  %vm268_vm15 = vcmp.eq.f32.partialorder %v267_v25, 8.507059e+37 }
 0x49b   :  { %v1483_v20 = vpop.eup %1482 }
 0x49c   :  { %v259_v21 = vmul.f32 %v1483_v20, %v257_v19  ;;  %vm264_vm12 = vweird.f32 %v1483_v20 }
 0x49d   :  { %vm265_vm14 = vmor %vm263_vm13, %vm264_vm12 }
 0x49e   :  { %v260_v22 = vsub.f32 1.0, %v259_v21 }
 0x4a0   :  { %v261_v24 = vmul.f32 %v1483_v20, %v260_v22 }
 0x4a2   :  { %v262_v26 = vadd.f32 %v1483_v20, %v261_v24 }
 0x4a4   :  { %v266_v29 = vsel %vm265_vm14, %v1483_v20, %v262_v26 }
 0x4a5   :  { %v271_v30 = vsel %vm268_vm15, %v270_v27, %v266_v29 }
 0x4a6   :  { %v291_v31 = vmul.f32 %v289_v28, %v271_v30  ;;  %v283_v39 = vsub.f32 1.0, %v271_v30 }
 0x4e2   :  { %v274_v32 = vpop.permute.xlu2 %273 }
 0x4e3   :  { %v276_v35 = vmul.f32 %v274_v32, %v271_v30 }
 0x4e5   :  { %278 = vrot.lane.b32.xlu0 %v276_v35, %s1610_s2 }
 0x4ed   :  { %319 = vrot.lane.b32.xlu0 %v248_v14, %s1607_s30 }
 0x557   :  { %v279_v36 = vpop.permute.xlu0 %278 }
 0x558   :  { %v281_v37 = vadd.f32 %v279_v36, %v1745_v13 }
 0x55a   :  { %1484 = vtanh.f32 %v281_v37 }
 0x55f   :  { %v320_v48 = vpop.permute.xlu0 %319 }
 0x560   :  { %v1485_v38 = vpop.eup %1484 }
 0x561   :  { %285 = vrot.lane.b32.xlu1 %v1485_v38, %s1611_s16 }
 0x569   :  { %342 = vrot.lane.b32.xlu1 %v248_v14, %s1609_s13 }
 0x5d3   :  { %v286_v40 = vpop.permute.xlu1 %285 }
 0x5d4   :  { %v288_v42 = vmul.f32 %v286_v40, %v283_v39 }
 0x5d6   :  { %v1798_v43 = vadd.f32 %v291_v31, %v288_v42 }
 0x5d8   :  { %360 = vrot.lane.b32.xlu1 %v1798_v43, %s1611_s16  ;;  %v294_v44 = vrot.slane %v1798_v43, 2  ;;  %v430_v39 = vrot.slane %v1798_v43, 6 }
 0x5da   :  { %295 = vrot.lane.b32.xlu2 %v294_v44, %s1611_s16 }
 0x5db   :  { %v343_v62 = vpop.permute.xlu1 %342 }
 0x634   :  { %v296_v45 = vpop.permute.xlu2 %295 }
 0x635   :  { %1424 = vmatmul.msk.f32.vlgmr.msrb.gmra.mxu2 %vm161_vm6, %v296_v45 }
 0x636   :  { %867 = vmatpush.msrb.mxu2 %v1754_v33 }
 0x638   :  { %868 = vmatpush.msrb.mxu2 %v1759_v34 }
 0x64a   :  { %v361_v18 = vpop.permute.xlu1 %360 }
 0x6b8   :  { %v316_v46 = vpop.f32.mrf.mxu2 }
 0x6b9   :  { %v317_v47 = vadd.f32 %v1777_v41, %v316_v46 }
 0x6bb   :  { %v322_v49 = vadd.f32 %v320_v48, %v317_v47 }
 0x6bd   :  { %v1425_v50 = vmul.f32 -1.442695, %v322_v49 }
 0x6bf   :  { %1486 = vpow2.f32 %v1425_v50 }
 0x6c5   :  { %v1487_v51 = vpop.eup %1486 }
 0x6c6   :  { %v326_v52 = vadd.f32 1.0, %v1487_v51 }
 0x6c8   :  { %1488 = vrcp.f32 %v326_v52  ;;  %v338_v56 = vand.u32 2147483648, %v326_v52  ;;  %v336_v58 = vand.u32 2147483647, %v326_v52  ;;  %vm332_vm3 = vweird.f32 %v326_v52 }
 0x6ca   :  { %v339_v60 = vor.u32 1.1754944e-38, %v338_v56  ;;  %vm337_vm5 = vcmp.eq.f32.partialorder %v336_v58, 8.507059e+37 }
 0x6ce   :  { %v1489_v53 = vpop.eup %1488 }
 0x6cf   :  { %v328_v54 = vmul.f32 %v1489_v53, %v326_v52  ;;  %vm333_vm2 = vweird.f32 %v1489_v53 }
 0x6d0   :  { %vm334_vm4 = vmor %vm332_vm3, %vm333_vm2 }
 0x6d1   :  { %v329_v55 = vsub.f32 1.0, %v328_v54 }
 0x6d3   :  { %v330_v57 = vmul.f32 %v1489_v53, %v329_v55 }
 0x6d5   :  { %v331_v59 = vadd.f32 %v1489_v53, %v330_v57 }
 0x6d7   :  { %v335_v61 = vsel %vm334_vm4, %v1489_v53, %v331_v59 }
 0x6d8   :  { %v340_v63 = vsel %vm337_vm5, %v339_v60, %v335_v61 }
 0x6d9   :  { %v345_v0 = vmul.f32 %v343_v62, %v340_v63  ;;  %v352_v10 = vsub.f32 1.0, %v340_v63  ;;  %v358_v14 = vmul.f32 %v340_v63, %v1782_v9 }
 0x6db   :  { %347 = vrot.lane.b32.xlu2 %v345_v0, %s1610_s2 }
 0x735   :  { %v348_v3 = vpop.permute.xlu2 %347 }
 0x736   :  { %v350_v4 = vadd.f32 %v348_v3, %v317_v47 }
 0x738   :  { %1490 = vtanh.f32 %v350_v4 }
 0x73e   :  { %v1491_v7 = vpop.eup %1490 }
 0x73f   :  { %354 = vrot.lane.b32.xlu0 %v1491_v7, %s1611_s16 }
 0x7b1   :  { %v355_v12 = vpop.permute.xlu0 %354 }
 0x7b2   :  { %v357_v15 = vmul.f32 %v355_v12, %v352_v10 }
 0x7b4   :  { %v1811_v16 = vadd.f32 %v358_v14, %v357_v15 }
 0x7b6   :  { %v364_v17 = vrot.slane %v1811_v16, 6 }
 0x7b8   :  { %v366_v19 = vsel %vm161_vm6, %v361_v18, %v364_v17 }
 0x7b9   :  { %v368_v20 = vrot.slane %v366_v19, 2 }
 0x7bb   :  { %1426 = vmatmul.msk.f32.vlgmr.msrb.gmra.mxu1 %vm92_vm11, %v368_v20 }
 0x7bc   :  { %937 = vmatpush.msrb.mxu1 %v1681_v1 }
 0x7be   :  { %938 = vmatpush.msrb.mxu1 %v1686_v2 }
 0x7c0   :  { %939 = vmatpush.msrb.mxu1 %v1699_v5 }
 0x7c2   :  { %940 = vmatpush.msrb.mxu1 %v1707_v6 }
 0x838   :  { %v388_v21 = vpop.f32.mrf.mxu1 }
 0x839   :  { %v389_v22 = vadd.f32 %v1733_v8, %v388_v21  ;;  %v49_v21 = vld [vmem:[%s2043_s0 + $0x8] sm:$0xff] }
 0x83a   :  { %1418 = vmatmul.msk.f32.gmra.mxu0 %vm55_vm1, %v49_v21 }
 0x83b   :  { %v392_v23 = vrot.slane %v389_v22, 4 }
 0x83d   :  { %414 = vrot.lane.b32.xlu2 %v392_v23, %s1608_s12  ;;  %v394_v24 = vadd.f32 %v392_v23, %v1745_v13 }
 0x83f   :  { %v1427_v25 = vmul.f32 -1.442695, %v394_v24 }
 0x841   :  { %1492 = vpow2.f32 %v1427_v25 }
 0x847   :  { %v1493_v26 = vpop.eup %1492 }
 0x848   :  { %v398_v27 = vadd.f32 1.0, %v1493_v26 }
 0x84a   :  { %1494 = vrcp.f32 %v398_v27  ;;  %v410_v31 = vand.u32 2147483648, %v398_v27  ;;  %v408_v35 = vand.u32 2147483647, %v398_v27  ;;  %vm404_vm8 = vweird.f32 %v398_v27 }
 0x84c   :  { %v411_v37 = vor.u32 1.1754944e-38, %v410_v31  ;;  %vm409_vm10 = vcmp.eq.f32.partialorder %v408_v35, 8.507059e+37 }
 0x850   :  { %v1495_v28 = vpop.eup %1494 }
 0x851   :  { %v400_v29 = vmul.f32 %v1495_v28, %v398_v27  ;;  %vm405_vm7 = vweird.f32 %v1495_v28 }
 0x852   :  { %vm406_vm9 = vmor %vm404_vm8, %vm405_vm7 }
 0x853   :  { %v401_v30 = vsub.f32 1.0, %v400_v29 }
 0x855   :  { %v402_v32 = vmul.f32 %v1495_v28, %v401_v30 }
 0x857   :  { %v403_v36 = vadd.f32 %v1495_v28, %v402_v32 }
 0x859   :  { %v407_v38 = vsel %vm406_vm9, %v1495_v28, %v403_v36 }
 0x85a   :  { %v412_v40 = vsel %vm409_vm10, %v411_v37, %v407_v38 }
 0x85b   :  { %v432_v42 = vmul.f32 %v430_v39, %v412_v40  ;;  %v424_v49 = vsub.f32 1.0, %v412_v40 }
 0x897   :  { %v415_v44 = vpop.permute.xlu2 %414 }
 0x898   :  { %v417_v45 = vmul.f32 %v415_v44, %v412_v40 }
 0x89a   :  { %419 = vrot.lane.b32.xlu0 %v417_v45, %s1610_s2 }
 0x8a2   :  { %460 = vrot.lane.b32.xlu0 %v389_v22, %s1607_s30 }
 0x8b7   :  { %v1855_v31 = vpop.f32.mrf.mxu0 }
 0x90c   :  { %v420_v46 = vpop.permute.xlu0 %419 }
 0x90d   :  { %v422_v47 = vadd.f32 %v420_v46, %v1745_v13 }
 0x90f   :  { %1496 = vtanh.f32 %v422_v47 }
 0x914   :  { %v461_v56 = vpop.permute.xlu0 %460 }
 0x915   :  { %v1497_v48 = vpop.eup %1496 }
 0x916   :  { %426 = vrot.lane.b32.xlu1 %v1497_v48, %s1611_s16 }
 0x91e   :  { %483 = vrot.lane.b32.xlu1 %v389_v22, %s1609_s13 }
 0x988   :  { %v427_v50 = vpop.permute.xlu1 %426 }
 0x989   :  { %v429_v43 = vmul.f32 %v427_v50, %v424_v49 }
 0x98b   :  { %v1829_v51 = vadd.f32 %v432_v42, %v429_v43 }
 0x98d   :  { %501 = vrot.lane.b32.xlu1 %v1829_v51, %s1611_s16  ;;  %v435_v52 = vrot.slane %v1829_v51, 4  ;;  %v571_v48 = vrot.slane %v1829_v51, 6 }
 0x98f   :  { %436 = vrot.lane.b32.xlu2 %v435_v52, %s1611_s16 }
 0x990   :  { %v484_v14 = vpop.permute.xlu1 %483 }
 0x9e9   :  { %v437_v53 = vpop.permute.xlu2 %436 }
 0x9ea   :  { %1428 = vmatmul.msk.f32.vlgmr.msrb.gmra.mxu3 %vm161_vm6, %v437_v53 }
 0x9eb   :  { %1008 = vmatpush.msrb.mxu3 %v1754_v33 }
 0x9ed   :  { %1009 = vmatpush.msrb.mxu3 %v1759_v34 }
 0x9ff   :  { %v502_v28 = vpop.permute.xlu1 %501 }
 0xa6d   :  { %v457_v54 = vpop.f32.mrf.mxu3 }
 0xa6e   :  { %v458_v55 = vadd.f32 %v1777_v41, %v457_v54 }
 0xa70   :  { %v463_v57 = vadd.f32 %v461_v56, %v458_v55 }
 0xa72   :  { %v1429_v58 = vmul.f32 -1.442695, %v463_v57 }
 0xa74   :  { %1498 = vpow2.f32 %v1429_v58 }
 0xa7a   :  { %v1499_v59 = vpop.eup %1498 }
 0xa7b   :  { %v467_v60 = vadd.f32 1.0, %v1499_v59 }
 0xa7d   :  { %1500 = vrcp.f32 %v467_v60  ;;  %v479_v0 = vand.u32 2147483648, %v467_v60  ;;  %v477_v4 = vand.u32 2147483647, %v467_v60  ;;  %vm473_vm13 = vweird.f32 %v467_v60 }
 0xa7f   :  { %v480_v10 = vor.u32 1.1754944e-38, %v479_v0  ;;  %vm478_vm15 = vcmp.eq.f32.partialorder %v477_v4, 8.507059e+37 }
 0xa83   :  { %v1501_v61 = vpop.eup %1500 }
 0xa84   :  { %v469_v62 = vmul.f32 %v1501_v61, %v467_v60  ;;  %vm474_vm12 = vweird.f32 %v1501_v61 }
 0xa85   :  { %vm475_vm14 = vmor %vm473_vm13, %vm474_vm12 }
 0xa86   :  { %v470_v63 = vsub.f32 1.0, %v469_v62 }
 0xa88   :  { %v471_v3 = vmul.f32 %v1501_v61, %v470_v63 }
 0xa8a   :  { %v472_v7 = vadd.f32 %v1501_v61, %v471_v3 }
 0xa8c   :  { %v476_v12 = vsel %vm475_vm14, %v1501_v61, %v472_v7 }
 0xa8d   :  { %v481_v15 = vsel %vm478_vm15, %v480_v10, %v476_v12 }
 0xa8e   :  { %v486_v17 = vmul.f32 %v484_v14, %v481_v15  ;;  %v493_v22 = vsub.f32 1.0, %v481_v15  ;;  %v499_v24 = vmul.f32 %v481_v15, %v1811_v16 }
 0xa90   :  { %488 = vrot.lane.b32.xlu2 %v486_v17, %s1610_s2 }
 0xaea   :  { %v489_v18 = vpop.permute.xlu2 %488 }
 0xaeb   :  { %v491_v19 = vadd.f32 %v489_v18, %v458_v55 }
 0xaed   :  { %1502 = vtanh.f32 %v491_v19 }
 0xaf3   :  { %v1503_v20 = vpop.eup %1502 }
 0xaf4   :  { %495 = vrot.lane.b32.xlu0 %v1503_v20, %s1611_s16 }
 0xb66   :  { %v496_v23 = vpop.permute.xlu0 %495 }
 0xb67   :  { %v498_v25 = vmul.f32 %v496_v23, %v493_v22 }
 0xb69   :  { %v1846_v26 = vadd.f32 %v499_v24, %v498_v25 }
 0xb6b   :  { %v505_v27 = vrot.slane %v1846_v26, 4 }
 0xb6d   :  { %v507_v29 = vsel %vm161_vm6, %v502_v28, %v505_v27 }
 0xb6e   :  { %v509_v30 = vrot.slane %v507_v29, 4 }
 0xb70   :  { %1430 = vmatmul.msk.f32.vlgmr.msrb.gmra.mxu0 %vm92_vm11, %v509_v30 }
 0xb71   :  { %1078 = vmatpush.msrb.mxu0 %v1681_v1 }
 0xb73   :  { %1079 = vmatpush.msrb.mxu0 %v1686_v2 }
 0xb75   :  { %1080 = vmatpush.msrb.mxu0 %v1699_v5 }
 0xb77   :  { %1081 = vmatpush.msrb.mxu0 %v1707_v6 }
 0xbed   :  { %v529_v32 = vpop.f32.mrf.mxu0 }
 0xbee   :  { %v530_v35 = vadd.f32 %v1733_v8, %v529_v32 }
 0xbf0   :  { %v533_v36 = vrot.slane %v530_v35, 2 }
 0xbf2   :  { %555 = vrot.lane.b32.xlu2 %v533_v36, %s1608_s12  ;;  %v535_v37 = vadd.f32 %v533_v36, %v1745_v13 }
 0xbf4   :  { %v1431_v38 = vmul.f32 -1.442695, %v535_v37 }
 0xbf6   :  { %1504 = vpow2.f32 %v1431_v38 }
 0xbfc   :  { %v1505_v39 = vpop.eup %1504 }
 0xbfd   :  { %v539_v1 = vadd.f32 1.0, %v1505_v39 }
 0xbff   :  { %1506 = vrcp.f32 %v539_v1  ;;  %v551_v42 = vand.u32 2147483648, %v539_v1  ;;  %v549_v44 = vand.u32 2147483647, %v539_v1  ;;  %vm545_vm2 = vweird.f32 %v539_v1 }
 0xc01   :  { %v552_v46 = vor.u32 1.1754944e-38, %v551_v42  ;;  %vm550_vm4 = vcmp.eq.f32.partialorder %v549_v44, 8.507059e+37 }
 0xc05   :  { %v1507_v2 = vpop.eup %1506 }
 0xc06   :  { %v541_v40 = vmul.f32 %v1507_v2, %v539_v1  ;;  %vm546_vm1 = vweird.f32 %v1507_v2  ;;  %v1890_v1 = vadd.f32 %v1742_v11, %v1855_v31 }
 0xc07   :  { %vm547_vm3 = vmor %vm545_vm2, %vm546_vm1 }
 0xc08   :  { %v542_v5 = vsub.f32 1.0, %v541_v40 }
 0xc0a   :  { %v543_v6 = vmul.f32 %v1507_v2, %v542_v5 }
 0xc0c   :  { %v544_v45 = vadd.f32 %v1507_v2, %v543_v6 }
 0xc0e   :  { %v548_v47 = vsel %vm547_vm3, %v1507_v2, %v544_v45 }
 0xc0f   :  { %v553_v49 = vsel %vm550_vm4, %v552_v46, %v548_v47 }
 0xc10   :  { %v573_v50 = vmul.f32 %v571_v48, %v553_v49  ;;  %v565_v56 = vsub.f32 1.0, %v553_v49 }
 0xc4c   :  { %v556_v43 = vpop.permute.xlu2 %555 }
 0xc4d   :  { %v558_v52 = vmul.f32 %v556_v43, %v553_v49 }
 0xc4f   :  { %560 = vrot.lane.b32.xlu0 %v558_v52, %s1610_s2 }
 0xc57   :  { %601 = vrot.lane.b32.xlu0 %v530_v35, %s1607_s30 }
 0xcc1   :  { %v561_v53 = vpop.permute.xlu0 %560 }
 0xcc2   :  { %v563_v54 = vadd.f32 %v561_v53, %v1745_v13 }
 0xcc4   :  { %1508 = vtanh.f32 %v563_v54 }
 0xcc9   :  { %v602_v62 = vpop.permute.xlu0 %601 }
 0xcca   :  { %v1509_v55 = vpop.eup %1508 }
 0xccb   :  { %567 = vrot.lane.b32.xlu1 %v1509_v55, %s1611_s16 }
 0xcd3   :  { %624 = vrot.lane.b32.xlu1 %v530_v35, %s1609_s13 }
 0xd3d   :  { %v568_v57 = vpop.permute.xlu1 %567 }
 0xd3e   :  { %v570_v51 = vmul.f32 %v568_v57, %v565_v56 }
 0xd40   :  { %v1866_v58 = vadd.f32 %v573_v50, %v570_v51 }
 0xd42   :  { %642 = vrot.lane.b32.xlu1 %v1866_v58, %s1611_s16  ;;  %v576_v59 = vrot.slane %v1866_v58, 6 }
 0xd44   :  { %577 = vrot.lane.b32.xlu2 %v576_v59, %s1611_s16 }
 0xd45   :  { %v625_v19 = vpop.permute.xlu1 %624 }
 0xd9e   :  { %v578_v13 = vpop.permute.xlu2 %577 }
 0xd9f   :  { %1432 = vmatmul.msk.f32.vlgmr.msra.gmra.mxu2 %vm161_vm6, %v578_v13 }
 0xda0   :  { %1149 = vmatpush.msra.mxu2 %v1754_v33 }
 0xda2   :  { %1150 = vmatpush.msra.mxu2 %v1759_v34 }
 0xdb4   :  { %v643_v35 = vpop.permute.xlu1 %642 }
 0xe22   :  { %v598_v60 = vpop.f32.mrf.mxu2 }
 0xe23   :  { %v599_v61 = vadd.f32 %v1777_v41, %v598_v60 }
 0xe25   :  { %v604_v63 = vadd.f32 %v602_v62, %v599_v61 }
 0xe27   :  { %v1433_v0 = vmul.f32 -1.442695, %v604_v63 }
 0xe29   :  { %1510 = vpow2.f32 %v1433_v0 }
 0xe2f   :  { %v1511_v3 = vpop.eup %1510 }
 0xe30   :  { %v608_v4 = vadd.f32 1.0, %v1511_v3 }
 0xe32   :  { %1512 = vrcp.f32 %v608_v4  ;;  %v620_v14 = vand.u32 2147483648, %v608_v4  ;;  %v618_v17 = vand.u32 2147483647, %v608_v4  ;;  %vm614_vm7 = vweird.f32 %v608_v4 }
 0xe34   :  { %v621_v34 = vor.u32 1.1754944e-38, %v620_v14  ;;  %vm619_vm9 = vcmp.eq.f32.partialorder %v618_v17, 8.507059e+37 }
 0xe38   :  { %v1513_v7 = vpop.eup %1512 }
 0xe39   :  { %v610_v10 = vmul.f32 %v1513_v7, %v608_v4  ;;  %vm615_vm5 = vweird.f32 %v1513_v7 }
 0xe3a   :  { %vm616_vm8 = vmor %vm614_vm7, %vm615_vm5 }
 0xe3b   :  { %v611_v12 = vsub.f32 1.0, %v610_v10 }
 0xe3d   :  { %v612_v15 = vmul.f32 %v1513_v7, %v611_v12 }
 0xe3f   :  { %v613_v33 = vadd.f32 %v1513_v7, %v612_v15 }
 0xe41   :  { %v617_v18 = vsel %vm616_vm8, %v1513_v7, %v613_v33 }
 0xe42   :  { %v622_v20 = vsel %vm619_vm9, %v621_v34, %v617_v18 }
 0xe43   :  { %v627_v21 = vmul.f32 %v625_v19, %v622_v20  ;;  %v634_v25 = vsub.f32 1.0, %v622_v20  ;;  %v640_v28 = vmul.f32 %v622_v20, %v1846_v26 }
 0xe45   :  { %629 = vrot.lane.b32.xlu2 %v627_v21, %s1610_s2 }
 0xe9f   :  { %v630_v22 = vpop.permute.xlu2 %629 }
 0xea0   :  { %v632_v23 = vadd.f32 %v630_v22, %v599_v61 }
 0xea2   :  { %1514 = vtanh.f32 %v632_v23 }
 0xea8   :  { %v1515_v24 = vpop.eup %1514 }
 0xea9   :  { %636 = vrot.lane.b32.xlu0 %v1515_v24, %s1611_s16 }
 0xf1b   :  { %v637_v27 = vpop.permute.xlu0 %636 }
 0xf1c   :  { %v639_v29 = vmul.f32 %v637_v27, %v634_v25 }
 0xf1e   :  { %v1881_v30 = vadd.f32 %v640_v28, %v639_v29 }
 0xf20   :  { %v646_v32 = vrot.slane %v1881_v30, 2 }
 0xf22   :  { %v648_v36 = vsel %vm161_vm6, %v643_v35, %v646_v32 }
 0xf23   :  { %v650_v37 = vrot.slane %v648_v36, 6 }
 0xf25   :  { %1434 = vmatmul.msk.f32.vlgmr.msra.gmra.mxu1 %vm92_vm11, %v650_v37 }
 0xfa2   :  { %v670_v38 = vpop.f32.mrf.mxu1 }
 0xfa3   :  { %v671_v39 = vadd.f32 %v1733_v8, %v670_v38 }
 0xfa5   :  { %694 = vrot.lane.b32.xlu2 %v671_v39, %s1608_s12  ;;  %v673_v2 = vadd.f32 %v671_v39, %v1890_v1 }
 0xfa7   :  { %v1435_v40 = vmul.f32 -1.442695, %v673_v2 }
 0xfa9   :  { %1516 = vpow2.f32 %v1435_v40 }
 0xfaf   :  { %v1517_v5 = vpop.eup %1516 }
 0xfb0   :  { %v677_v42 = vadd.f32 1.0, %v1517_v5 }
 0xfb2   :  { %1518 = vrcp.f32 %v677_v42  ;;  %v689_v48 = vand.u32 2147483648, %v677_v42  ;;  %vm683_vm12 = vweird.f32 %v677_v42  ;;  %v687_v49 = vand.u32 2147483647, %v677_v42 }
 0xfb4   :  { %v690_v11 = vor.u32 1.1754944e-38, %v689_v48  ;;  %vm688_vm14 = vcmp.eq.f32.partialorder %v687_v49, 8.507059e+37 }
 0xfb8   :  { %v1519_v6 = vpop.eup %1518 }
 0xfb9   :  { %v679_v44 = vmul.f32 %v1519_v6, %v677_v42  ;;  %vm684_vm10 = vweird.f32 %v1519_v6 }
 0xfba   :  { %vm685_vm13 = vmor %vm683_vm12, %vm684_vm10 }
 0xfbb   :  { %v680_v45 = vsub.f32 1.0, %v679_v44 }
 0xfbd   :  { %v681_v46 = vmul.f32 %v1519_v6, %v680_v45 }
 0xfbf   :  { %v682_v47 = vadd.f32 %v1519_v6, %v681_v46 }
 0xfc1   :  { %v686_v50 = vsel %vm685_vm13, %v1519_v6, %v682_v47 }
 0xfc2   :  { %v691_v43 = vsel %vm688_vm14, %v690_v11, %v686_v50 }
 0xfc3   :  { %v704_v56 = vsub.f32 1.0, %v691_v43  ;;  %v711_v51 = vmul.f32 %v691_v43, %v576_v59 }
 0xfff   :  { %v695_v31 = vpop.permute.xlu2 %694 }
0x1000   :  { %v697_v52 = vmul.f32 %v695_v31, %v691_v43 }
0x1002   :  { %699 = vrot.lane.b32.xlu0 %v697_v52, %s1610_s2 }
0x100a   :  { %738 = vrot.lane.b32.xlu0 %v671_v39, %s1607_s30 }
0x1074   :  { %v700_v53 = vpop.permute.xlu0 %699 }
0x1075   :  { %v702_v54 = vadd.f32 %v700_v53, %v1890_v1 }
0x1077   :  { %1520 = vtanh.f32 %v702_v54 }
0x107c   :  { %v739_v0 = vpop.permute.xlu0 %738 }
0x107d   :  { %v1521_v55 = vpop.eup %1520 }
0x107e   :  { %706 = vrot.lane.b32.xlu1 %v1521_v55, %s1611_s16 }
0x1086   :  { %761 = vrot.lane.b32.xlu1 %v671_v39, %s1609_s13 }
0x10f0   :  { %v707_v57 = vpop.permute.xlu1 %706 }
0x10f1   :  { %v709_v13 = vmul.f32 %v707_v57, %v704_v56 }
0x10f3   :  { %v1900_v60 = vadd.f32 %v711_v51, %v709_v13 }
0x10f5   :  { %714 = vrot.lane.b32.xlu2 %v1900_v60, %s1611_s16  ;;  %v843_v54 = vrot.slane %v1900_v60, 6 }
0x10f8   :  { %v762_v19 = vpop.permute.xlu1 %761 }
0x114f   :  { %v715_v61 = vpop.permute.xlu2 %714 }
0x1150   :  { %1436 = vmatmul.msk.f32.vlgmr.msra.gmra.mxu3 %vm161_vm6, %v715_v61 }
0x11d3   :  { %v735_v62 = vpop.f32.mrf.mxu3 }
0x11d4   :  { %v736_v63 = vadd.f32 %v1777_v41, %v735_v62 }
0x11d6   :  { %v741_v3 = vadd.f32 %v739_v0, %v736_v63 }
0x11d8   :  { %v1437_v4 = vmul.f32 -1.442695, %v741_v3 }
0x11da   :  { %1522 = vpow2.f32 %v1437_v4 }
0x11e0   :  { %v1523_v7 = vpop.eup %1522 }
0x11e1   :  { %v745_v10 = vadd.f32 1.0, %v1523_v7 }
0x11e3   :  { %1524 = vrcp.f32 %v745_v10  ;;  %v757_v14 = vand.u32 2147483648, %v745_v10  ;;  %v755_v17 = vand.u32 2147483647, %v745_v10  ;;  %vm751_vm1 = vweird.f32 %v745_v10 }
0x11e5   :  { %v758_v34 = vor.u32 1.1754944e-38, %v757_v14  ;;  %vm756_vm3 = vcmp.eq.f32.partialorder %v755_v17, 8.507059e+37 }
0x11e9   :  { %v1525_v58 = vpop.eup %1524 }
0x11ea   :  { %v747_v59 = vmul.f32 %v1525_v58, %v745_v10  ;;  %vm752_vm15 = vweird.f32 %v1525_v58 }
0x11eb   :  { %vm753_vm2 = vmor %vm751_vm1, %vm752_vm15 }
0x11ec   :  { %v748_v12 = vsub.f32 1.0, %v747_v59 }
0x11ee   :  { %v749_v15 = vmul.f32 %v1525_v58, %v748_v12 }
0x11f0   :  { %v750_v33 = vadd.f32 %v1525_v58, %v749_v15 }
0x11f2   :  { %v754_v18 = vsel %vm753_vm2, %v1525_v58, %v750_v33 }
0x11f3   :  { %v759_v20 = vsel %vm756_vm3, %v758_v34, %v754_v18 }
0x11f4   :  { %v764_v21 = vmul.f32 %v762_v19, %v759_v20  ;;  %v771_v25 = vsub.f32 1.0, %v759_v20  ;;  %v777_v28 = vmul.f32 %v759_v20, %v1881_v30 }
0x11f6   :  { %766 = vrot.lane.b32.xlu2 %v764_v21, %s1610_s2 }
0x1250   :  { %v767_v22 = vpop.permute.xlu2 %766 }
0x1251   :  { %v769_v23 = vadd.f32 %v767_v22, %v736_v63 }
0x1253   :  { %1526 = vtanh.f32 %v769_v23 }
0x1259   :  { %v1527_v24 = vpop.eup %1526 }
0x125a   :  { %773 = vrot.lane.b32.xlu0 %v1527_v24, %s1611_s16 }
0x12cc   :  { %v774_v27 = vpop.permute.xlu0 %773 }
0x12cd   :  { %v776_v29 = vmul.f32 %v774_v27, %v771_v25 }
0x12cf   :  { %v1909_v32 = vadd.f32 %v777_v28, %v776_v29 }
0x12d1   :  { %v780_v35 = vsel %vm161_vm6, %v715_v61, %v1909_v32 }
0x12d2   :  { %1438 = vmatmul.msk.f32.vlgmr.msra.gmra.mxu0 %vm92_vm11, %v780_v35 }
0x134f   :  { %v801_v36 = vpop.f32.mrf.mxu0 }
0x1350   :  { %v802_v37 = vadd.f32 %v1733_v8, %v801_v36 }
0x1352   :  { %v805_v38 = vrot.slane %v802_v37, 6 }
0x1354   :  { %827 = vrot.lane.b32.xlu1 %v805_v38, %s1608_s12  ;;  %v807_v39 = vadd.f32 %v805_v38, %v1890_v1 }
0x1356   :  { %v1439_v2 = vmul.f32 -1.442695, %v807_v39 }
0x1358   :  { %1528 = vpow2.f32 %v1439_v2  ;;  %v1942_v2 = vld [vmem:[%s2047_s4] ss:$0 sm:$0xff] }
0x135e   :  { %v1529_v40 = vpop.eup %1528 }
0x135f   :  { %v811_v5 = vadd.f32 1.0, %v1529_v40 }
0x1361   :  { %1530 = vrcp.f32 %v811_v5  ;;  %v823_v47 = vand.u32 2147483648, %v811_v5  ;;  %vm817_vm5 = vweird.f32 %v811_v5  ;;  %v821_v48 = vand.u32 2147483647, %v811_v5 }
0x1363   :  { %v824_v49 = vor.u32 1.1754944e-38, %v823_v47  ;;  %vm822_vm8 = vcmp.eq.f32.partialorder %v821_v48, 8.507059e+37 }
0x1367   :  { %v1531_v42 = vpop.eup %1530 }
0x1368   :  { %v813_v6 = vmul.f32 %v1531_v42, %v811_v5  ;;  %vm818_vm4 = vweird.f32 %v1531_v42 }
0x1369   :  { %vm819_vm7 = vmor %vm817_vm5, %vm818_vm4 }
0x136a   :  { %v814_v44 = vsub.f32 1.0, %v813_v6 }
0x136c   :  { %v815_v45 = vmul.f32 %v1531_v42, %v814_v44 }
0x136e   :  { %v816_v46 = vadd.f32 %v1531_v42, %v815_v45 }
0x1370   :  { %v820_v8 = vsel %vm819_vm7, %v1531_v42, %v816_v46 }
0x1371   :  { %v825_v11 = vsel %vm822_vm8, %v824_v49, %v820_v8 }
0x1372   :  { %v837_v55 = vsub.f32 1.0, %v825_v11  ;;  %v845_v57 = vmul.f32 %v843_v54, %v825_v11 }
0x13c6   :  { %v828_v50 = vpop.permute.xlu1 %827 }
0x13c7   :  { %v830_v31 = vmul.f32 %v828_v50, %v825_v11 }
0x13c9   :  { %832 = vrot.lane.b32.xlu2 %v830_v31, %s1610_s2 }
0x13d1   :  { %873 = vrot.lane.b32.xlu2 %v802_v37, %s1607_s30 }
0x1423   :  { %v833_v43 = vpop.permute.xlu2 %832 }
0x1424   :  { %v835_v52 = vadd.f32 %v833_v43, %v1890_v1 }
0x1426   :  { %1532 = vtanh.f32 %v835_v52 }
0x142b   :  { %v874_v60 = vpop.permute.xlu2 %873 }
0x142c   :  { %v1533_v53 = vpop.eup %1532 }
0x142d   :  { %839 = vrot.lane.b32.xlu0 %v1533_v53, %s1611_s16 }
0x1435   :  { %896 = vrot.lane.b32.xlu0 %v802_v37, %s1609_s13 }
0x149f   :  { %v840_v56 = vpop.permute.xlu0 %839 }
0x14a0   :  { %v842_v51 = vmul.f32 %v840_v56, %v837_v55 }
0x14a2   :  { %v1923_v13 = vadd.f32 %v845_v57, %v842_v51 }
0x14a4   :  { %914 = vrot.lane.b32.xlu0 %v1923_v13, %s1611_s16  ;;  %v848_v61 = vrot.slane %v1923_v13, 2 }
0x14a6   :  { %849 = vrot.lane.b32.xlu1 %v848_v61, %s1611_s16  ;;  %v984_v61 = vrot.slane %v1923_v13, 6  ;;  %v1963_v13 = vld [vmem:[%s2049_s6] ss:$0 sm:$0xff] }
0x1518   :  { %v850_v62 = vpop.permute.xlu1 %849 }
0x1519   :  { %1440 = vmatmul.msk.f32.vlgmr.msrb.gmra.mxu2 %vm161_vm6, %v850_v62 }
0x159c   :  { %v870_v63 = vpop.f32.mrf.mxu2 }
0x159d   :  { %v871_v0 = vadd.f32 %v1777_v41, %v870_v63  ;;  %v897_v41 = vpop.permute.xlu0 %896 }
0x159f   :  { %v876_v3 = vadd.f32 %v874_v60, %v871_v0 }
0x15a1   :  { %v1441_v4 = vmul.f32 -1.442695, %v876_v3 }
0x15a3   :  { %1534 = vpow2.f32 %v1441_v4 }
0x15a5   :  { %v915_v36 = vpop.permute.xlu0 %914 }
0x15a9   :  { %v1535_v7 = vpop.eup %1534 }
0x15aa   :  { %v880_v10 = vadd.f32 1.0, %v1535_v7 }
0x15ac   :  { %1536 = vrcp.f32 %v880_v10  ;;  %v892_v14 = vand.u32 2147483648, %v880_v10  ;;  %v890_v17 = vand.u32 2147483647, %v880_v10  ;;  %vm886_vm10 = vweird.f32 %v880_v10 }
0x15ae   :  { %v893_v34 = vor.u32 1.1754944e-38, %v892_v14  ;;  %vm891_vm13 = vcmp.eq.f32.partialorder %v890_v17, 8.507059e+37 }
0x15b2   :  { %v1537_v58 = vpop.eup %1536 }
0x15b3   :  { %v882_v59 = vmul.f32 %v1537_v58, %v880_v10  ;;  %vm887_vm9 = vweird.f32 %v1537_v58 }
0x15b4   :  { %vm888_vm12 = vmor %vm886_vm10, %vm887_vm9 }
0x15b5   :  { %v883_v12 = vsub.f32 1.0, %v882_v59 }
0x15b7   :  { %v884_v15 = vmul.f32 %v1537_v58, %v883_v12 }
0x15b9   :  { %v885_v33 = vadd.f32 %v1537_v58, %v884_v15 }
0x15bb   :  { %v889_v18 = vsel %vm888_vm12, %v1537_v58, %v885_v33 }
0x15bc   :  { %v894_v19 = vsel %vm891_vm13, %v893_v34, %v889_v18 }
0x15bd   :  { %v899_v20 = vmul.f32 %v897_v41, %v894_v19  ;;  %v906_v24 = vsub.f32 1.0, %v894_v19  ;;  %v912_v27 = vmul.f32 %v894_v19, %v1909_v32 }
0x15bf   :  { %901 = vrot.lane.b32.xlu1 %v899_v20, %s1610_s2 }
0x1631   :  { %v902_v21 = vpop.permute.xlu1 %901 }
0x1632   :  { %v904_v22 = vadd.f32 %v902_v21, %v871_v0 }
0x1634   :  { %1538 = vtanh.f32 %v904_v22 }
0x163a   :  { %v1539_v23 = vpop.eup %1538 }
0x163b   :  { %908 = vrot.lane.b32.xlu2 %v1539_v23, %s1611_s16 }
0x1695   :  { %v909_v25 = vpop.permute.xlu2 %908 }
0x1696   :  { %v911_v28 = vmul.f32 %v909_v25, %v906_v24 }
0x1698   :  { %v1934_v29 = vadd.f32 %v912_v27, %v911_v28 }
0x169a   :  { %v918_v35 = vrot.slane %v1934_v29, 6 }
0x169c   :  { %v920_v37 = vsel %vm161_vm6, %v915_v36, %v918_v35 }
0x169d   :  { %v922_v38 = vrot.slane %v920_v37, 2 }
0x169f   :  { %1442 = vmatmul.msk.f32.vlgmr.msrb.gmra.mxu1 %vm92_vm11, %v922_v38 }
0x171c   :  { %v942_v39 = vpop.f32.mrf.mxu1 }
0x171d   :  { %v943_v40 = vadd.f32 %v1942_v2, %v942_v39 }
0x171f   :  { %v946_v5 = vrot.slane %v943_v40, 4 }
0x1721   :  { %968 = vrot.lane.b32.xlu1 %v946_v5, %s1608_s12  ;;  %v948_v42 = vadd.f32 %v946_v5, %v1890_v1 }
0x1723   :  { %v1443_v6 = vmul.f32 -1.442695, %v948_v42 }
0x1725   :  { %1540 = vpow2.f32 %v1443_v6 }
0x172b   :  { %v1541_v44 = vpop.eup %1540 }
0x172c   :  { %v952_v45 = vadd.f32 1.0, %v1541_v44 }
0x172e   :  { %1542 = vrcp.f32 %v952_v45  ;;  %v964_v50 = vand.u32 2147483648, %v952_v45  ;;  %vm958_vm15 = vweird.f32 %v952_v45  ;;  %v962_v11 = vand.u32 2147483647, %v952_v45 }
0x1730   :  { %v965_v43 = vor.u32 1.1754944e-38, %v964_v50  ;;  %vm963_vm2 = vcmp.eq.f32.partialorder %v962_v11, 8.507059e+37 }
0x1734   :  { %v1543_v46 = vpop.eup %1542 }
0x1735   :  { %v954_v47 = vmul.f32 %v1543_v46, %v952_v45  ;;  %vm959_vm14 = vweird.f32 %v1543_v46 }
0x1736   :  { %vm960_vm1 = vmor %vm958_vm15, %vm959_vm14 }
0x1737   :  { %v955_v48 = vsub.f32 1.0, %v954_v47 }
0x1739   :  { %v956_v8 = vmul.f32 %v1543_v46, %v955_v48 }
0x173b   :  { %v957_v49 = vadd.f32 %v1543_v46, %v956_v8 }
0x173d   :  { %v961_v31 = vsel %vm960_vm1, %v1543_v46, %v957_v49  ;;  %vm1238_vm1 = vcmask 1041408  }
0x173e   :  { %v966_v53 = vsel %vm963_vm2, %v965_v43, %v961_v31  ;;  %vm1241_vm2 = vcmask 1042432  }
0x173f   :  { %v978_v51 = vsub.f32 1.0, %v966_v53  ;;  %v986_v63 = vmul.f32 %v984_v61, %v966_v53 }
0x1793   :  { %v969_v52 = vpop.permute.xlu1 %968 }
0x1794   :  { %v971_v54 = vmul.f32 %v969_v52, %v966_v53 }
0x1796   :  { %973 = vrot.lane.b32.xlu2 %v971_v54, %s1610_s2 }
0x179e   :  { %1014 = vrot.lane.b32.xlu2 %v943_v40, %s1607_s30 }
0x17f0   :  { %v974_v55 = vpop.permute.xlu2 %973 }
0x17f1   :  { %v976_v56 = vadd.f32 %v974_v55, %v1890_v1 }
0x17f3   :  { %1544 = vtanh.f32 %v976_v56 }
0x17f8   :  { %v1015_v58 = vpop.permute.xlu2 %1014 }
0x17f9   :  { %v1545_v57 = vpop.eup %1544 }
0x17fa   :  { %980 = vrot.lane.b32.xlu0 %v1545_v57, %s1611_s16 }
0x1802   :  { %1037 = vrot.lane.b32.xlu0 %v943_v40, %s1609_s13 }
0x186c   :  { %v981_v62 = vpop.permute.xlu0 %980 }
0x186d   :  { %v983_v0 = vmul.f32 %v981_v62, %v978_v51 }
0x186f   :  { %v1953_v60 = vadd.f32 %v986_v63, %v983_v0 }
0x1871   :  { %1055 = vrot.lane.b32.xlu0 %v1953_v60, %s1611_s16  ;;  %v989_v3 = vrot.slane %v1953_v60, 4 }
0x1873   :  { %990 = vrot.lane.b32.xlu1 %v989_v3, %s1611_s16 }
0x1874   :  { %v1038_v23 = vpop.permute.xlu0 %1037 }
0x18e3   :  { %v1056_v42 = vpop.permute.xlu0 %1055 }
0x18e5   :  { %v991_v4 = vpop.permute.xlu1 %990 }
0x18e6   :  { %1444 = vmatmul.msk.f32.vlgmr.msrb.gmra.mxu3 %vm161_vm6, %v991_v4  ;;  %v1125_v4 = vrot.slane %v1953_v60, 6 }
0x1969   :  { %v1011_v7 = vpop.f32.mrf.mxu3 }
0x196a   :  { %v1012_v10 = vadd.f32 %v1963_v13, %v1011_v7 }
0x196c   :  { %v1017_v59 = vadd.f32 %v1015_v58, %v1012_v10 }
0x196e   :  { %v1445_v12 = vmul.f32 -1.442695, %v1017_v59 }
0x1970   :  { %1546 = vpow2.f32 %v1445_v12 }
0x1976   :  { %v1547_v14 = vpop.eup %1546 }
0x1977   :  { %v1021_v15 = vadd.f32 1.0, %v1547_v14 }
0x1979   :  { %1548 = vrcp.f32 %v1021_v15  ;;  %v1033_v18 = vand.u32 2147483648, %v1021_v15  ;;  %v1031_v19 = vand.u32 2147483647, %v1021_v15  ;;  %vm1027_vm4 = vweird.f32 %v1021_v15 }
0x197b   :  { %v1034_v21 = vor.u32 1.1754944e-38, %v1033_v18  ;;  %vm1032_vm7 = vcmp.eq.f32.partialorder %v1031_v19, 8.507059e+37 }
0x197f   :  { %v1549_v17 = vpop.eup %1548 }
0x1980   :  { %v1023_v33 = vmul.f32 %v1549_v17, %v1021_v15  ;;  %vm1028_vm3 = vweird.f32 %v1549_v17 }
0x1981   :  { %vm1029_vm5 = vmor %vm1027_vm4, %vm1028_vm3  ;;  %vm1244_vm3 = vcmask 1043456   ;;  %vm1250_vm4 = vcmask 1045504  }
0x1982   :  { %v1024_v34 = vsub.f32 1.0, %v1023_v33 }
0x1984   :  { %v1025_v41 = vmul.f32 %v1549_v17, %v1024_v34  ;;  %v1466_v34 = vld [vmem:[%s2050_s7] ss:$0 sm:$0xff] }
0x1986   :  { %v1026_v20 = vadd.f32 %v1549_v17, %v1025_v41 }
0x1988   :  { %v1030_v22 = vsel %vm1029_vm5, %v1549_v17, %v1026_v20  ;;  %vm1253_vm5 = vcmask 1046528  }
0x1989   :  { %v1035_v24 = vsel %vm1032_vm7, %v1034_v21, %v1030_v22  ;;  %vm1286_vm7 = vcmask 1041409  }
0x198a   :  { %v1040_v25 = vmul.f32 %v1038_v23, %v1035_v24  ;;  %v1047_v36 = vsub.f32 1.0, %v1035_v24  ;;  %v1053_v38 = vmul.f32 %v1035_v24, %v1934_v29 }
0x198c   :  { %1042 = vrot.lane.b32.xlu1 %v1040_v25, %s1610_s2 }
0x19fe   :  { %v1043_v27 = vpop.permute.xlu1 %1042 }
0x19ff   :  { %v1045_v28 = vadd.f32 %v1043_v27, %v1012_v10 }
0x1a01   :  { %1550 = vtanh.f32 %v1045_v28 }
0x1a07   :  { %v1551_v35 = vpop.eup %1550 }
0x1a08   :  { %1049 = vrot.lane.b32.xlu2 %v1551_v35, %s1611_s16 }
0x1a62   :  { %v1050_v37 = vpop.permute.xlu2 %1049 }
0x1a63   :  { %v1052_v39 = vmul.f32 %v1050_v37, %v1047_v36 }
0x1a65   :  { %v1969_v40 = vadd.f32 %v1053_v38, %v1052_v39 }
0x1a67   :  { %v1059_v5 = vrot.slane %v1969_v40, 4 }
0x1a69   :  { %v1061_v6 = vsel %vm161_vm6, %v1056_v42, %v1059_v5  ;;  %v1199_v5 = vrot.slane %v1811_v16, 1  ;;  %v1208_v42 = vperm.slane %v1811_v16, 0  ;;  %v1216_v16 = vperm.slane %v1881_v30, 0 }
0x1a6a   :  { %v1063_v44 = vrot.slane %v1061_v6, 4 }
0x1a6b   :  { %v1209_v6 = vperm.slane %v1199_v5, 0 }
0x1a6c   :  { %1446 = vmatmul.msk.f32.vlgmr.msrb.gmra.mxu0 %vm92_vm11, %v1063_v44  ;;  %v1200_v44 = vrot.slane %v1846_v26, 1 }
0x1ae9   :  { %v1083_v45 = vpop.f32.mrf.mxu0 }
0x1aea   :  { %v1084_v46 = vadd.f32 %v1942_v2, %v1083_v45  ;;  %v1197_v45 = vrot.slane %v1782_v9, 1 }
0x1aec   :  { %v1087_v47 = vrot.slane %v1084_v46, 2 }
0x1aee   :  { %1109 = vrot.lane.b32.xlu1 %v1087_v47, %s1608_s12  ;;  %v1089_v48 = vadd.f32 %v1087_v47, %v1890_v1  ;;  %v1236_v47 = vsel %vm62_vm0, %v1782_v9, %v1208_v42  ;;  %s1405_s12 = sshll.u32 %s2054_s11, 4  ;;  %s1406_s12 = int_to_ptr.hbm [resolvable:$true] %s1405_s12 }
0x1af0   :  { %v1447_v8 = vmul.f32 -1.442695, %v1089_v48  ;;  %v1237_v48 = vsel %vm62_vm0, %v1197_v45, %v1209_v6  ;;  %vm1247_vm0 = vcmask 1044480  }
0x1af2   :  { %1552 = vpow2.f32 %v1447_v8  ;;  %v1212_v8 = vperm.slane %v1846_v26, 0 }
0x1af8   :  { %v1553_v49 = vpop.eup %1552 }
0x1af9   :  { %v1093_v50 = vadd.f32 1.0, %v1553_v49  ;;  %v1203_v49 = vrot.slane %v1909_v32, 1 }
0x1afb   :  { %1554 = vrcp.f32 %v1093_v50  ;;  %v1105_v54 = vand.u32 2147483648, %v1093_v50  ;;  %vm1099_vm11 = vweird.f32 %v1093_v50  ;;  %v1103_v55 = vand.u32 2147483647, %v1093_v50 }
0x1afd   :  { %v1106_v56 = vor.u32 1.1754944e-38, %v1105_v54  ;;  %vm1104_vm10 = vcmp.eq.f32.partialorder %v1103_v55, 8.507059e+37  ;;  %v1224_v54 = vperm.slane %v1934_v29, 0 }
0x1b01   :  { %v1555_v11 = vpop.eup %1554 }
0x1b02   :  { %v1095_v31 = vmul.f32 %v1555_v11, %v1093_v50  ;;  %vm1100_vm8 = vweird.f32 %v1555_v11  ;;  %v1213_v50 = vperm.slane %v1200_v44, 0 }
0x1b03   :  { %vm1101_vm9 = vmor %vm1099_vm11, %vm1100_vm8  ;;  %vm1289_vm8 = vcmask 58368   ;;  %vm1344_vm11 = vcmask 261248  }
0x1b04   :  { %v1096_v43 = vsub.f32 1.0, %v1095_v31 }
0x1b06   :  { %v1097_v52 = vmul.f32 %v1555_v11, %v1096_v43 }
0x1b08   :  { %v1098_v53 = vadd.f32 %v1555_v11, %v1097_v52  ;;  %v1220_v52 = vperm.slane %v1909_v32, 0 }
0x1b0a   :  { %v1102_v2 = vsel %vm1101_vm9, %v1555_v11, %v1098_v53  ;;  %v1204_v11 = vrot.slane %v1934_v29, 1  ;;  %v1205_v53 = vrot.slane %v1969_v40, 1  ;;  %vm1394_vm9 = vcmask 1024  }
0x1b0b   :  { %v1107_v51 = vsel %vm1104_vm10, %v1106_v56, %v1102_v2  ;;  %v1239_v2 = vsel %vm1238_vm1, %v1236_v47, %v1212_v8  ;;  %v1221_v56 = vperm.slane %v1203_v49, 0 }
0x1b0c   :  { %v1119_v3 = vsub.f32 1.0, %v1107_v51  ;;  %v1127_v10 = vmul.f32 %v1125_v4, %v1107_v51 }
0x1b60   :  { %v1110_v57 = vpop.permute.xlu1 %1109 }
0x1b61   :  { %v1112_v61 = vmul.f32 %v1110_v57, %v1107_v51  ;;  %v1242_v57 = vsel %vm1241_vm2, %v1239_v2, %v1216_v16  ;;  %v1225_v51 = vperm.slane %v1204_v11, 0  ;;  %v1361_v2 = vld [vmem:[%s2051_s8] sm:$0xff] }
0x1b63   :  { %1114 = vrot.lane.b32.xlu2 %v1112_v61, %s1610_s2  ;;  %v1240_v61 = vsel %vm1238_vm1, %v1237_v48, %v1213_v50 }
0x1b6b   :  { %1155 = vrot.lane.b32.xlu2 %v1084_v46, %s1607_s30 }
0x1bbd   :  { %v1115_v62 = vpop.permute.xlu2 %1114 }
0x1bbe   :  { %v1117_v63 = vadd.f32 %v1115_v62, %v1890_v1  ;;  %v1245_v62 = vsel %vm1244_vm3, %v1242_v57, %v1220_v52 }
0x1bc0   :  { %1556 = vtanh.f32 %v1117_v63  ;;  %v1229_v63 = vperm.slane %v1205_v53, 0 }
0x1bc5   :  { %v1156_v17 = vpop.permute.xlu2 %1155 }
0x1bc6   :  { %v1557_v0 = vpop.eup %1556 }
0x1bc7   :  { %1121 = vrot.lane.b32.xlu0 %v1557_v0, %s1611_s16  ;;  %v1248_v0 = vsel %vm1247_vm0, %v1245_v62, %v1224_v54 }
0x1bcf   :  { %1178 = vrot.lane.b32.xlu0 %v1084_v46, %s1609_s13  ;;  %v1201_v46 = vrot.slane %v1881_v30, 1  ;;  %v1228_v30 = vperm.slane %v1969_v40, 0 }
0x1bd1   :  { %v1217_v43 = vperm.slane %v1201_v46, 0 }
0x1bd3   :  { %v1243_v29 = vsel %vm1241_vm2, %v1240_v61, %v1217_v43 }
0x1bd7   :  { %1261 = vrot.lane.b32.xlu0 %v1466_v34, %s1612_s26 }
0x1c39   :  { %v1122_v7 = vpop.permute.xlu0 %1121 }
0x1c3a   :  { %v1124_v58 = vmul.f32 %v1122_v7, %v1119_v3  ;;  %v1246_v7 = vsel %vm1244_vm3, %v1243_v29, %v1221_v56 }
0x1c3c   :  { %v1128_v59 = vadd.f32 %v1127_v10, %v1124_v58  ;;  %v1249_v10 = vsel %vm1247_vm0, %v1246_v7, %v1225_v51 }
0x1c3e   :  { %v1130_v12 = vrot.slane %v1128_v59, 6 }
0x1c40   :  { %1131 = vrot.lane.b32.xlu1 %v1130_v12, %s1611_s16  ;;  %v1252_v12 = vsel %vm1250_vm4, %v1249_v10, %v1229_v63 }
0x1c41   :  { %v1179_v28 = vpop.permute.xlu0 %1178 }
0x1cb2   :  { %v1132_v14 = vpop.permute.xlu1 %1131 }
0x1cb3   :  { %1448 = vmatmul.msk.f32.vlgmr.msra.gmra.mxu2 %vm161_vm6, %v1132_v14 }
0x1d36   :  { %v1152_v1 = vpop.f32.mrf.mxu2 }
0x1d37   :  { %v1153_v15 = vadd.f32 %v1963_v13, %v1152_v1  ;;  %v1262_v1 = vpop.permute.xlu0 %1261 }
0x1d39   :  { %v1158_v33 = vadd.f32 %v1156_v17, %v1153_v15 }
0x1d3b   :  { %v1449_v60 = vmul.f32 -1.442695, %v1158_v33 }
0x1d3d   :  { %1558 = vpow2.f32 %v1449_v60 }
0x1d43   :  { %v1559_v18 = vpop.eup %1558 }
0x1d44   :  { %v1162_v41 = vadd.f32 1.0, %v1559_v18 }
0x1d46   :  { %1560 = vrcp.f32 %v1162_v41  ;;  %v1174_v22 = vand.u32 2147483648, %v1162_v41  ;;  %v1172_v13 = vand.u32 2147483647, %v1162_v41  ;;  %vm1168_vm13 = vweird.f32 %v1162_v41 }
0x1d48   :  { %v1175_v25 = vor.u32 1.1754944e-38, %v1174_v22  ;;  %vm1173_vm15 = vcmp.eq.f32.partialorder %v1172_v13, 8.507059e+37 }
0x1d4c   :  { %v1561_v19 = vpop.eup %1560 }
0x1d4d   :  { %v1164_v20 = vmul.f32 %v1561_v19, %v1162_v41  ;;  %vm1169_vm12 = vweird.f32 %v1561_v19 }
0x1d4e   :  { %vm1170_vm14 = vmor %vm1168_vm13, %vm1169_vm12 }
0x1d4f   :  { %v1165_v21 = vsub.f32 1.0, %v1164_v20  ;;  %v1282_v20 = vlaneseq }
0x1d51   :  { %v1166_v23 = vmul.f32 %v1561_v19, %v1165_v21  ;;  %v1283_v21 = vand.u32 127, %v1282_v20 }
0x1d53   :  { %v1167_v24 = vadd.f32 %v1561_v19, %v1166_v23 }
0x1d55   :  { %v1171_v27 = vsel %vm1170_vm14, %v1561_v19, %v1167_v24 }
0x1d56   :  { %v1176_v35 = vsel %vm1173_vm15, %v1175_v25, %v1171_v27 }
0x1d57   :  { %v1181_v36 = vmul.f32 %v1179_v28, %v1176_v35  ;;  %v1188_v31 = vsub.f32 1.0, %v1176_v35  ;;  %v1194_v26 = vmul.f32 %v1176_v35, %v1969_v40  ;;  %v1251_v40 = vsel %vm1250_vm4, %v1248_v0, %v1228_v30 }
0x1d58   :  { %v1613_v28 = vmov 0  }
0x1d59   :  { %1183 = vrot.lane.b32.xlu1 %v1181_v36, %s1610_s2  ;;  %1461 = vset.pattern.permute.xlu0 %v1613_v28 }
0x1d5a   :  { %1460 = vset.pattern.permute.xlu2 %v1613_v28  ;;  %1462 = vset.pattern.permute.xlu1 %v1613_v28 }
0x1dcb   :  { %v1184_v37 = vpop.permute.xlu1 %1183 }
0x1dcc   :  { %v1186_v38 = vadd.f32 %v1184_v37, %v1153_v15 }
0x1dce   :  { %1562 = vtanh.f32 %v1186_v38 }
0x1dd4   :  { %v1563_v39 = vpop.eup %1562 }
0x1dd5   :  { %1190 = vrot.lane.b32.xlu2 %v1563_v39, %s1611_s16 }
0x1e2f   :  { %v1191_v9 = vpop.permute.xlu2 %1190 }
0x1e30   :  { %v1193_v55 = vmul.f32 %v1191_v9, %v1188_v31 }
0x1e32   :  { %v1195_v32 = vadd.f32 %v1194_v26, %v1193_v55  ;;  %v1362_v55 = vld [vmem:[%s2051_s8 + $0x8] sm:$0xff]  ;;  %s1614_s8 = smov [#allocation3]  }
0x1e33   :  { %1388 = vmatpush.msra.mxu1 %v1362_v55  ;;  %s1403_s1 = sshll.u32 %s1614_s8, 4  ;;  %s1404_s1 = int_to_ptr.vmem [resolvable:$true] %s1403_s1 }
0x1e34   :  { %v1207_v3 = vrot.slane %v1195_v32, 1  ;;  %v1232_v4 = vperm.slane %v1195_v32, 0 }
0x1e35   :  { %1389 = vmatpush.msra.mxu1 %v1361_v2 }
0x1e36   :  { %v1233_v58 = vperm.slane %v1207_v3, 0  ;;  %v2014_v59 = vsel %vm1253_vm5, %v1251_v40, %v1232_v4 }
0x1e37   :  { %1564 = vtanh.f32 %v2014_v59 }
0x1e38   :  { %v1255_v14 = vsel %vm1253_vm5, %v1252_v12, %v1233_v58 }
0x1e39   :  { %1566 = vtanh.f32 %v1255_v14 }
0x1e3d   :  { %v1565_v15 = vpop.eup %1564 }
0x1e3e   :  { %v1264_v17 = vmul.f32 %v1565_v15, %v1262_v1 }
0x1e3f   :  { %v1567_v33 = vpop.eup %1566 }
0x1e40   :  { %v1265_v34 = vmul.f32 %v1567_v33, %v1262_v1  ;;  %1268 = vrot.lane.b32.xlu1 %v1264_v17, %s1611_s16  ;;  %v1467_v17 = vld [vmem:[#allocation2] ss:$0 sm:$0xff] }
0x1e42   :  { %1270 = vrot.lane.b32.xlu2 %v1265_v34, %s1611_s16 }
0x1e9c   :  { %v1271_v60 = vpop.permute.xlu2 %1270 }
0x1e9d   :  { %v1277_v18 = vsel %vm161_vm6, %v1271_v60, 0.0 }
0x1e9e   :  { %1278 = vadd.xlane.f32.xlu1 %v1277_v18 }
0x1eb2   :  { %v1269_v41 = vpop.permute.xlu1 %1268 }
0x1eb3   :  { %v1274_v19 = vsel %vm161_vm6, %v1269_v41, 0.0 }
0x1eb4   :  { %1275 = vadd.xlane.f32.xlu0 %v1274_v19 }
0x1f11   :  { %v1279_v22 = vpop.xlane.xlu1 %1278 }
0x1f12   :  { %v1285_v13 = vperm.slane %v1279_v22, %v1283_v21 }
0x1f27   :  { %v1276_v23 = vpop.xlane.xlu0 %1275 }
0x1f28   :  { %v1284_v24 = vperm.slane %v1276_v23, %v1283_v21 }
0x1f2a   :  { %v1287_v25 = vsel %vm1286_vm7, %v1285_v13, %v1284_v24 }
0x1f2b   :  { %v1290_v27 = vsel %vm1289_vm8, %v1287_v25, -inf }
0x1f2c   :  { %1291 = vmax.xlane.f32.xlu2 %v1290_v27 }
0x1f9f   :  { %v1292_v35 = vpop.xlane.xlu2 %1291 }
0x1fa0   :  { %v1294_v36 = vperm.slane %v1292_v35, 0  ;;  %v1295_v37 = vperm.slane %v1292_v35, 1 }
0x1fa2   :  { %v1298_v38 = vsub.f32 %v1276_v23, %v1294_v36  ;;  %v1299_v39 = vsub.f32 %v1279_v22, %v1295_v37 }
0x1fa4   :  { %v1300_v5 = vmul.f32 1.442695, %v1298_v38  ;;  %v1302_v42 = vmul.f32 1.442695, %v1299_v39 }
0x1fa6   :  { %1568 = vpow2.f32 %v1300_v5 }
0x1fa7   :  { %1570 = vpow2.f32 %v1302_v42 }
0x1fac   :  { %v1569_v6 = vpop.eup %1568 }
0x1fad   :  { %v1571_v44 = vpop.eup %1570  ;;  %1307 = vperm.xlu2 %1460, %v1569_v6  }
0x1fae   :  { %1310 = vperm.xlu0 %1461, %v1571_v44  }
0x2007   :  { %v1308_v45 = vpop.permute.xlu2 %1307 }
0x2008   :  { %v1312_v47 = vperm.slane %v1308_v45, %v1283_v21 }
0x2020   :  { %v1311_v46 = vpop.permute.xlu0 %1310 }
0x2021   :  { %v1313_v48 = vperm.slane %v1311_v46, %v1283_v21 }
0x2023   :  { %v1314_v8 = vsel %vm1286_vm7, %v1313_v48, %v1312_v47 }
0x2024   :  { %v1316_v49 = vsel %vm1289_vm8, %v1314_v8, 0.0 }
0x2025   :  { %1317 = vadd.xlane.f32.xlu1 %v1316_v49 }
0x2098   :  { %v1318_v50 = vpop.xlane.xlu1 %1317 }
0x2099   :  { %1572 = vrcp.f32 %v1318_v50 }
0x209f   :  { %v1573_v16 = vpop.eup %1572 }
0x20a0   :  { %v1322_v11 = vperm.slane %v1573_v16, 1  ;;  %v1321_v31 = vperm.slane %v1573_v16, 0 }
0x20a2   :  { %v1326_v43 = vmul.f32 %v1571_v44, %v1322_v11  ;;  %v1325_v52 = vmul.f32 %v1569_v6, %v1321_v31 }
0x20a4   :  { %1333 = vperm.xlu2 %1460, %v1326_v43   ;;  %1330 = vperm.xlu1 %1462, %v1325_v52  }
0x20fe   :  { %v1334_v53 = vpop.permute.xlu2 %1333 }
0x20ff   :  { %v1343_v9 = vmul.f32 %v1334_v53, %v1255_v14  ;;  %v1336_v51 = vperm.slane %v1334_v53, %v1283_v21 }
0x2101   :  { %v1352_v54 = vsel %vm1344_vm11, %v1343_v9, 0.0 }
0x2102   :  { %v1353_v26 = vrot.slane %v1352_v54, 4 }
0x2104   :  { %v1354_v56 = vadd.f32 %v1353_v26, %v1352_v54 }
0x2106   :  { %v1355_v30 = vrot.slane %v1354_v56, 2 }
0x2108   :  { %v1356_v62 = vadd.f32 %v1355_v30, %v1354_v56 }
0x210a   :  { %v1357_v4 = vrot.slane %v1356_v62, 1 }
0x210c   :  { %v1358_v10 = vadd.f32 %v1357_v4, %v1356_v62 }
0x210e   :  { %1574 = vtanh.f32 %v1358_v10 }
0x2114   :  { %v1575_v14 = vpop.eup %1574 }
0x2116   :  { %v1331_v57 = vpop.permute.xlu1 %1330 }
0x2117   :  { %v1335_v32 = vperm.slane %v1331_v57, %v1283_v21  ;;  %v1342_v61 = vmul.f32 %v1331_v57, %v2014_v59 }
0x2119   :  { %v1345_v63 = vsel %vm1344_vm11, %v1342_v61, 0.0  ;;  %v1337_v29 = vsel %vm1286_vm7, %v1336_v51, %v1335_v32 }
0x211a   :  { %v1346_v0 = vrot.slane %v1345_v63, 4  ;;  %1339 = vst.msk [vmem:[#allocation3] sm:$0x3] %vm1289_vm8, %v1337_v29 }
0x211b   :  { %1408 = dma.vmem_to_hbm [thread:$0]  %s1404_s1, 32, %s1406_s12, [#allocation4]  }
0x211c   :  { %v1347_v3 = vadd.f32 %v1346_v0, %v1345_v63 }
0x211e   :  { %v1348_v7 = vrot.slane %v1347_v3, 2 }
0x2120   :  { %v1349_v40 = vadd.f32 %v1348_v7, %v1347_v3 }
0x2122   :  { %v1350_v58 = vrot.slane %v1349_v40, 1 }
0x2124   :  { %v1351_v12 = vadd.f32 %v1350_v58, %v1349_v40 }
0x2126   :  { %1576 = vtanh.f32 %v1351_v12 }
0x212c   :  { %v1577_v1 = vpop.eup %1576 }
0x212d   :  { %v1369_v59 = vsel %vm1286_vm7, %v1575_v14, %v1577_v1 }
0x212e   :  { %1370 = vrot.lane.b32.xlu2 %v1369_v59, %s1611_s16 }
0x2188   :  { %v1371_v15 = vpop.permute.xlu2 %1370 }
0x2189   :  { %1450 = vmatmul.msk.f32.vlgmr.msra.gmra.mxu1 %vm161_vm6, %v1371_v15 }
0x2206   :  { %v1391_v33 = vpop.f32.mrf.mxu1 }
0x2207   :  { %v1392_v34 = vadd.f32 %v1467_v17, %v1391_v33 }
0x2209   :  { %1395 = vst.msk [vmem:[%s2053_s10] sm:$0x3] %vm1394_vm9, %v1392_v34 }
0x220a   :  { %1604 = dma.done.wait [#allocation4], 32  }
0x220b   :  { %1605 = vsyncadd [#allocation4], 4294967264 }
0x220c   :  { %1415 = vsyncpa [#allocation4], 1 }

</bundles_post_ra>
